<compile_context>
chip_gen: v7x
topology: tpu7x:2x2x1
jax: 0.10.0
libtpu: 0.0.40
codegen_flags: <defaults>
</compile_context>

<pallas_src>
import functools

import numpy as np
import jax
import jax.numpy as jnp
from jax.experimental import pallas as pl
from jax.experimental.pallas import tpu as pltpu


def bilstm_crf_kernel(emb2_ref, pp_ref, feats_ref, bptr_ref, term_ref,
                      *, start_tag, stop_tag):
    T2, E2 = emb2_ref.shape          # (2T, 2E): rows interleave fwd / reversed bwd
    T = T2 // 2
    H8 = pp_ref.shape[1]             # 8 * H (per-direction hidden size H)
    H = H8 // 8
    K = feats_ref.shape[1]           # tagset size
    H2, H4, H6 = 2 * H, 4 * H, 6 * H

    # packed-parameter row offsets (must match pack_params layout)
    o_whh = E2                       # w_in_stack rows [0, 2E)
    o_wtag = o_whh + H2              # w_hh_stack rows [2E, 2E+2H)
    o_small = o_wtag + H2            # wtag rows      [2E+2H, 2E+4H)
    n_small = 4 + 1 + K              # b_f, b_b, state_f, state_b, btag, trans

    emb2 = emb2_ref[...]                              # (2T, 2E)
    w_in = pp_ref[0:o_whh, :]                         # (2E, 8H) cols [i i f f o o g g]
    w_hh = pp_ref[o_whh:o_wtag, :]                    # (2H, 8H) rows [fwd | bwd]
    wtag = pp_ref[o_wtag:o_small, 0:K]                # (2H, K)
    small = pp_ref[o_small:o_small + n_small, :]      # (5+K, 8H)
    bias2 = small[0:2, :]                             # (2, 8H): b_f_dup, b_b_dup
    state = small[2:4, 0:H4]                          # (2, 4H): [h0 dup | c0 dup]
    btag = small[4:5, 0:K]                            # (1, K)
    trans = small[5:5 + K, 0:K]                       # (K, K): row=next, col=prev

    # direction mask: row0 keeps lanes [0,H) (fwd), row1 keeps lanes [H,2H) (bwd)
    lane = jax.lax.broadcasted_iota(jnp.int32, (2, H2), 1)
    row = jax.lax.broadcasted_iota(jnp.int32, (2, H2), 0)
    dmask = jnp.where((row == 1) != (lane < H), 1.0, 0.0)

    # ---- hoisted input projection: one (2T,2E)x(2E,8H) matmul for both
    # directions and all timesteps (time/direction alignment is baked into
    # the interleaved emb2 rows built in the wrapper). ----
    gia = jnp.dot(emb2, w_in, preferred_element_type=jnp.float32)   # (2T, 8H)

    # ---- fused forward/backward recurrence (T=8 -> unrolled) ----
    h_m = state[:, 0:H2] * dmask     # (2, 2H) block-masked hidden  [h_f,0 ; 0,h_b]
    c = state[:, H2:H4]              # (2, 2H) lane-duplicated cell [c,c] per row
    hs = []
    for t in range(T):
        g_hh = jnp.dot(h_m, w_hh, preferred_element_type=jnp.float32)  # (2, 8H)
        g2 = gia[2 * t:2 * t + 2, :] + g_hh + bias2                     # (2, 8H)
        ifo = jax.nn.sigmoid(g2[:, 0:H6])          # one EUP batch for i, f, o
        gg = jnp.tanh(g2[:, H6:H8])                # (2, 2H) dup
        c = ifo[:, H2:H4] * c + ifo[:, 0:H2] * gg                       # (2, 2H)
        h_dup = ifo[:, H4:H6] * jnp.tanh(c)                             # (2, 2H)
        h_m = h_dup * dmask                        # masked for next matmul LHS
        hs.append(h_m)                             # stays in registers

    # lstm_out[r] = [h_fwd(r) | h_bwd(r)]   (assembled from registers, no scratch)
    fwd_rows = jnp.concatenate([h[0:1, :] for h in hs], axis=0)          # (T, 2H)
    bwd_rows = jnp.concatenate([h[1:2, :] for h in hs[::-1]], axis=0)    # (T, 2H)
    lstm_out = fwd_rows + bwd_rows

    # ---- hidden2tag ----
    feats = jnp.dot(lstm_out, wtag, preferred_element_type=jnp.float32) + btag
    feats_ref[...] = feats                                               # (T, K)

    # ---- Viterbi forward pass: max-product scores + backpointers ----
    col = jax.lax.broadcasted_iota(jnp.int32, (1, K), 1)
    forward_var = jnp.where(col == start_tag, 0.0,
                            jnp.full((1, K), -10000.0, jnp.float32))
    iota_kk = jax.lax.broadcasted_iota(jnp.int32, (K, K), 1)
    bp_rows = []
    for t in range(T):
        nxt = forward_var + trans                        # (K, K)
        vmax = jnp.max(nxt, axis=-1, keepdims=True)      # (K, 1)
        # first index achieving the max (torch.argmax tie-breaking)
        bptrs = jnp.min(jnp.where(nxt == vmax, iota_kk, K), axis=-1)     # (K,)
        bp_rows.append(bptrs.reshape(1, K).astype(jnp.int32))
        # second lane-reduce yields the (1,K)-oriented max directly (avoids a
        # (K,1)->(1,K) relayout); K=5 -> one cheap XLU op/step.
        forward_var = jnp.max(nxt, axis=-1).reshape(1, K) + feats[t:t + 1, :]
    bptr_ref[...] = jnp.concatenate(bp_rows, axis=0)     # single dense store
    term_ref[...] = forward_var + trans[stop_tag:stop_tag + 1, :]


def _dup_gate_cols(w, H):
    # (R, 4H) cols in torch order [i, f, g, o] -> (R, 8H) cols [i i f f o o g g]
    i, f, g, o = w[:, 0:H], w[:, H:2 * H], w[:, 2 * H:3 * H], w[:, 3 * H:4 * H]
    return jnp.concatenate([i, i, f, f, o, o, g, g], axis=1)


def pack_params(params):
    """One-time (model-init) packing of the 14 torch-layout parameter arrays
    into a single (2E + 4H + 5 + K, 8H) f32 array -> one parameter DMA/call."""
    H = params["whh_f"].shape[0]
    H8 = 8 * H

    def pad_lanes(x):
        return jnp.pad(x, ((0, 0), (0, H8 - x.shape[1])))

    w_in = jnp.concatenate([_dup_gate_cols(params["wih_f"], H),
                            _dup_gate_cols(params["wih_b"], H)], axis=0)   # (2E, 8H)
    w_hh = jnp.concatenate([_dup_gate_cols(params["whh_f"], H),
                            _dup_gate_cols(params["whh_b"], H)], axis=0)   # (2H, 8H)
    wtag = pad_lanes(params["wtag"])                                       # (2H, 8H)
    b_f = _dup_gate_cols(params["b_f"], H)                                 # (1, 8H)
    b_b = _dup_gate_cols(params["b_b"], H)
    st_f = pad_lanes(jnp.concatenate([params["h0f"], params["h0f"],
                                      params["c0f"], params["c0f"]], axis=1))
    st_b = pad_lanes(jnp.concatenate([params["h0b"], params["h0b"],
                                      params["c0b"], params["c0b"]], axis=1))
    btag = pad_lanes(params["btag"])
    trans = pad_lanes(params["transitions"])
    return jnp.concatenate(
        [w_in, w_hh, wtag, b_f, b_b, st_f, st_b, btag, trans],
        axis=0).astype(jnp.float32)


@functools.partial(jax.jit, static_argnames=("start_tag", "stop_tag"))
def bilstm_crf_forward(emb, pp, *, start_tag, stop_tag):
    T, E = emb.shape
    H = pp.shape[1] // 8
    K = pp.shape[0] - 2 * E - 4 * H - 5

    # Interleave fwd / time-reversed bwd rows, block-masked on the feature
    # axis: row 2t = [emb[t], 0], row 2t+1 = [0, emb[T-1-t]]. With the
    # (2E, 8H) stacked input weights the kernel's hoisted projection lands
    # time/direction-aligned, so the recurrence reads a contiguous (2, 8H)
    # slice per step (no per-step concatenate).
    z = jnp.zeros_like(emb)
    emb2 = jnp.stack([jnp.concatenate([emb, z], axis=1),
                      jnp.concatenate([z, emb[::-1]], axis=1)],
                     axis=1).reshape(2 * T, 2 * E)

    kernel = functools.partial(bilstm_crf_kernel,
                               start_tag=start_tag, stop_tag=stop_tag)
    vmem = pl.BlockSpec(memory_space=pltpu.MemorySpace.VMEM)
    feats, bptrs, terminal = pl.pallas_call(
        kernel,
        out_shape=(jax.ShapeDtypeStruct((T, K), jnp.float32),
                   jax.ShapeDtypeStruct((T, K), jnp.int32),
                   jax.ShapeDtypeStruct((1, K), jnp.float32)),
        in_specs=[vmem, vmem],
        out_specs=(vmem, vmem, vmem),
    )(emb2, pp)
    return feats, bptrs, terminal


def backtrack(bptrs, terminal, start_tag):
    # TODO(synk): backpointer traversal is an inherently sequential, scalar,
    # data-dependent chain; done on host (matches torch reference loop).
    bptrs = np.asarray(bptrs)
    terminal = np.asarray(terminal)
    best = int(np.argmax(terminal[0]))
    score = float(terminal[0, best])
    path = [best]
    for t in range(bptrs.shape[0] - 1, -1, -1):
        best = int(bptrs[t, best])
        path.append(best)
    start = path.pop()
    assert start == start_tag
    path.reverse()
    return score, path


# ---------------- numpy references (for verification) ----------------
def reference_feats_np(emb, p):
    emb = np.asarray(emb, np.float32)
    P = {k: np.asarray(v, np.float32) for k, v in p.items()}
    H = P["h0f"].shape[1]

    def sigm(x):
        return 1.0 / (1.0 + np.exp(-x))

    def cell(x, h, c, wih, whh, b):
        g = x @ wih + h @ whh + b
        i = sigm(g[:, :H]); f = sigm(g[:, H:2 * H])
        gg = np.tanh(g[:, 2 * H:3 * H]); o = sigm(g[:, 3 * H:4 * H])
        c = f * c + i * gg
        return o * np.tanh(c), c

    T = emb.shape[0]
    h, c = P["h0f"], P["c0f"]
    fwd = []
    for t in range(T):
        h, c = cell(emb[t:t + 1], h, c, P["wih_f"], P["whh_f"], P["b_f"])
        fwd.append(h)
    h, c = P["h0b"], P["c0b"]
    bwd = [None] * T
    for t in range(T - 1, -1, -1):
        h, c = cell(emb[t:t + 1], h, c, P["wih_b"], P["whh_b"], P["b_b"])
        bwd[t] = h
    out = np.concatenate([np.concatenate(fwd, 0), np.concatenate(bwd, 0)], axis=1)
    return out @ P["wtag"] + P["btag"]


def numpy_viterbi(feats, trans, start_tag, stop_tag):
    K = trans.shape[0]
    fv = np.full((K,), -10000.0, np.float32)
    fv[start_tag] = 0.0
    bptrs_all = []
    for t in range(feats.shape[0]):
        nxt = fv[None, :] + trans
        b = np.argmax(nxt, axis=1)
        fv = nxt[np.arange(K), b] + feats[t]
        bptrs_all.append(b)
    term = fv + trans[stop_tag]
    best = int(np.argmax(term))
    score = float(term[best])
    path = [best]
    for b in reversed(bptrs_all):
        best = int(b[best])
        path.append(best)
    start = path.pop()
    assert start == start_tag
    path.reverse()
    return score, path


if __name__ == "__main__":
    # tag_to_ix = {"B": 0, "I": 1, "O": 2, "<START>": 3, "<STOP>": 4}
    START_IDX, STOP_IDX, K = 3, 4, 5
    vocab_size, embedding_dim, hidden_dim, T = 20, 16, 32, 8
    Hd = hidden_dim // 2

    key = jax.random.PRNGKey(0)
    keys = jax.random.split(key, 16)

    embed_table = jax.random.normal(keys[0], (vocab_size, embedding_dim), jnp.float32)
    bound = 1.0 / np.sqrt(Hd)

    def u(k, shape):
        return jax.random.uniform(k, shape, jnp.float32, -bound, bound)

    wih_f = u(keys[1], (4 * Hd, embedding_dim))
    whh_f = u(keys[2], (4 * Hd, Hd))
    bih_f = u(keys[3], (4 * Hd,))
    bhh_f = u(keys[4], (4 * Hd,))
    wih_b = u(keys[5], (4 * Hd, embedding_dim))
    whh_b = u(keys[6], (4 * Hd, Hd))
    bih_b = u(keys[7], (4 * Hd,))
    bhh_b = u(keys[8], (4 * Hd,))
    wtag = u(keys[9], (K, hidden_dim))
    btag = u(keys[10], (K,))
    trans = jax.random.normal(keys[11], (K, K), jnp.float32)
    trans = trans.at[START_IDX, :].set(-10000.0)
    trans = trans.at[:, STOP_IDX].set(-10000.0)
    h0 = jax.random.normal(keys[12], (2, 1, Hd), jnp.float32)
    c0 = jax.random.normal(keys[13], (2, 1, Hd), jnp.float32)
    sentence = jax.random.randint(keys[14], (T,), 0, vocab_size)

    # torch-layout parameter dict (kept for the numpy reference)
    params = dict(
        wih_f=wih_f.T, whh_f=whh_f.T, b_f=(bih_f + bhh_f).reshape(1, -1),
        wih_b=wih_b.T, whh_b=whh_b.T, b_b=(bih_b + bhh_b).reshape(1, -1),
        h0f=h0[0], c0f=c0[0], h0b=h0[1], c0b=c0[1],
        wtag=wtag.T, btag=btag.reshape(1, -1), transitions=trans)

    # one-time parameter packing (model init), single kernel input
    pp = jax.block_until_ready(pack_params(params))

    # embedding lookup (gather) done as JAX glue outside the kernel
    emb = embed_table[sentence]                    # (T, E)

    feats, bptrs, terminal = jax.block_until_ready(
        bilstm_crf_forward(emb, pp, start_tag=START_IDX, stop_tag=STOP_IDX))
    score, tag_seq = backtrack(bptrs, terminal, START_IDX)

    # (1) LSTM + hidden2tag features vs exact f32 numpy reference; tolerance
    # covers single-pass bf16 MXU matmuls (default precision).
    feats_np = np.asarray(feats)
    feats_ref = reference_feats_np(np.asarray(emb), params)
    assert np.allclose(feats_np, feats_ref, atol=3e-2, rtol=3e-2), \
        f"lstm feats mismatch: max abs err {np.max(np.abs(feats_np - feats_ref))}"

    # (2) Viterbi logic vs numpy Viterbi run on the *kernel's* feats (same f32
    # inputs -> decision-for-decision comparison, independent of matmul rounding).
    ref_score, ref_path = numpy_viterbi(feats_np, np.asarray(trans),
                                        START_IDX, STOP_IDX)
    assert tag_seq == ref_path, f"tag sequence mismatch: {tag_seq} vs {ref_path}"
    assert abs(score - ref_score) < 1e-3, "viterbi score mismatch"

    print("KERNEL_OK")
</pallas_src>

<mosaic_0001>
module attributes {stable_mosaic.version = 11 : i64} {
  func.func @bilstm_crf_kernel(%arg0: memref<16x32xf32, #tpu.memory_space<vmem>>, %arg1: memref<106x128xf32, #tpu.memory_space<vmem>>, %arg2: memref<8x5xf32, #tpu.memory_space<vmem>>, %arg3: memref<8x5xi32, #tpu.memory_space<vmem>>, %arg4: memref<1x5xf32, #tpu.memory_space<vmem>>) attributes {dimension_semantics = [], scalar_prefetch = 0 : i64, scratch_operands = 0 : i64, tpu.core_type = #tpu.core_type<tc>} {
    %c0 = arith.constant 0 : index
    %c0_0 = arith.constant 0 : index
    %0 = vector.load %arg0[%c0, %c0_0] : memref<16x32xf32, #tpu.memory_space<vmem>>, vector<16x32xf32>
    %c0_1 = arith.constant 0 : index
    %c0_2 = arith.constant 0 : index
    %1 = vector.load %arg1[%c0_1, %c0_2] : memref<106x128xf32, #tpu.memory_space<vmem>>, vector<32x128xf32>
    %c32 = arith.constant 32 : index
    %c0_3 = arith.constant 0 : index
    %2 = vector.load %arg1[%c32, %c0_3] : memref<106x128xf32, #tpu.memory_space<vmem>>, vector<32x128xf32>
    %c64 = arith.constant 64 : index
    %c0_4 = arith.constant 0 : index
    %3 = vector.load %arg1[%c64, %c0_4] : memref<106x128xf32, #tpu.memory_space<vmem>>, vector<32x5xf32>
    %c96 = arith.constant 96 : index
    %c0_5 = arith.constant 0 : index
    %4 = vector.load %arg1[%c96, %c0_5] : memref<106x128xf32, #tpu.memory_space<vmem>>, vector<10x128xf32>
    %5 = vector.extract_strided_slice %4 {offsets = [0, 0], sizes = [2, 128], strides = [1, 1]} : vector<10x128xf32> to vector<2x128xf32>
    %6 = vector.extract_strided_slice %4 {offsets = [2, 0], sizes = [2, 64], strides = [1, 1]} : vector<10x128xf32> to vector<2x64xf32>
    %7 = vector.extract_strided_slice %4 {offsets = [4, 0], sizes = [1, 5], strides = [1, 1]} : vector<10x128xf32> to vector<1x5xf32>
    %8 = vector.extract_strided_slice %4 {offsets = [5, 0], sizes = [5, 5], strides = [1, 1]} : vector<10x128xf32> to vector<5x5xf32>
    %9 = tpu.iota {dimensions = array<i32: 1>} : vector<2x32xi32>
    %10 = tpu.iota {dimensions = array<i32: 0>} : vector<2x32xi32>
    %c1_i32 = arith.constant 1 : i32
    %11 = vector.broadcast %c1_i32 : i32 to vector<2x32xi32>
    %12 = arith.cmpi eq, %10, %11 : vector<2x32xi32>
    %c16_i32 = arith.constant 16 : i32
    %13 = vector.broadcast %c16_i32 : i32 to vector<2x32xi32>
    %14 = arith.cmpi slt, %9, %13 : vector<2x32xi32>
    %15 = arith.xori %12, %14 : vector<2x32xi1>
    %cst = arith.constant 1.000000e+00 : f32
    %cst_6 = arith.constant 0.000000e+00 : f32
    %16 = vector.broadcast %cst : f32 to vector<2x32xf32>
    %17 = vector.broadcast %cst_6 : f32 to vector<2x32xf32>
    %18 = arith.select %15, %16, %17 : vector<2x32xi1>, vector<2x32xf32>
    %cst_7 = arith.constant dense<0.000000e+00> : vector<16x128xf32>
    %19 = tpu.matmul %0, %1, %cst_7 {dimension_numbers = #tpu.dot_dimension_numbers<[1], [0], [0], [1], [0, 0, 1, 1], [], []>} : vector<16x32xf32>, vector<32x128xf32>, vector<16x128xf32> -> vector<16x128xf32>
    %20 = vector.extract_strided_slice %6 {offsets = [0, 0], sizes = [2, 32], strides = [1, 1]} : vector<2x64xf32> to vector<2x32xf32>
    %21 = arith.mulf %20, %18 : vector<2x32xf32>
    %22 = vector.extract_strided_slice %6 {offsets = [0, 32], sizes = [2, 32], strides = [1, 1]} : vector<2x64xf32> to vector<2x32xf32>
    %cst_8 = arith.constant dense<0.000000e+00> : vector<2x128xf32>
    %23 = tpu.matmul %21, %2, %cst_8 {dimension_numbers = #tpu.dot_dimension_numbers<[1], [0], [0], [1], [0, 0, 1, 1], [], []>} : vector<2x32xf32>, vector<32x128xf32>, vector<2x128xf32> -> vector<2x128xf32>
    %24 = vector.extract_strided_slice %19 {offsets = [0, 0], sizes = [2, 128], strides = [1, 1]} : vector<16x128xf32> to vector<2x128xf32>
    %25 = arith.addf %24, %23 : vector<2x128xf32>
    %26 = arith.addf %25, %5 : vector<2x128xf32>
    %27 = vector.extract_strided_slice %26 {offsets = [0, 0], sizes = [2, 96], strides = [1, 1]} : vector<2x128xf32> to vector<2x96xf32>
    %28 = arith.negf %27 : vector<2x96xf32>
    %29 = math.exp %28 : vector<2x96xf32>
    %cst_9 = arith.constant 1.000000e+00 : f32
    %30 = vector.broadcast %cst_9 : f32 to vector<2x96xf32>
    %31 = arith.addf %30, %29 : vector<2x96xf32>
    %32 = arith.divf %30, %31 : vector<2x96xf32>
    %33 = vector.extract_strided_slice %26 {offsets = [0, 96], sizes = [2, 32], strides = [1, 1]} : vector<2x128xf32> to vector<2x32xf32>
    %34 = math.tanh %33 : vector<2x32xf32>
    %35 = vector.extract_strided_slice %32 {offsets = [0, 32], sizes = [2, 32], strides = [1, 1]} : vector<2x96xf32> to vector<2x32xf32>
    %36 = arith.mulf %35, %22 : vector<2x32xf32>
    %37 = vector.extract_strided_slice %32 {offsets = [0, 0], sizes = [2, 32], strides = [1, 1]} : vector<2x96xf32> to vector<2x32xf32>
    %38 = arith.mulf %37, %34 : vector<2x32xf32>
    %39 = arith.addf %36, %38 : vector<2x32xf32>
    %40 = vector.extract_strided_slice %32 {offsets = [0, 64], sizes = [2, 32], strides = [1, 1]} : vector<2x96xf32> to vector<2x32xf32>
    %41 = math.tanh %39 : vector<2x32xf32>
    %42 = arith.mulf %40, %41 : vector<2x32xf32>
    %43 = arith.mulf %42, %18 : vector<2x32xf32>
    %cst_10 = arith.constant dense<0.000000e+00> : vector<2x128xf32>
    %44 = tpu.matmul %43, %2, %cst_10 {dimension_numbers = #tpu.dot_dimension_numbers<[1], [0], [0], [1], [0, 0, 1, 1], [], []>} : vector<2x32xf32>, vector<32x128xf32>, vector<2x128xf32> -> vector<2x128xf32>
    %45 = vector.extract_strided_slice %19 {offsets = [2, 0], sizes = [2, 128], strides = [1, 1]} : vector<16x128xf32> to vector<2x128xf32>
    %46 = arith.addf %45, %44 : vector<2x128xf32>
    %47 = arith.addf %46, %5 : vector<2x128xf32>
    %48 = vector.extract_strided_slice %47 {offsets = [0, 0], sizes = [2, 96], strides = [1, 1]} : vector<2x128xf32> to vector<2x96xf32>
    %49 = arith.negf %48 : vector<2x96xf32>
    %50 = math.exp %49 : vector<2x96xf32>
    %cst_11 = arith.constant 1.000000e+00 : f32
    %51 = vector.broadcast %cst_11 : f32 to vector<2x96xf32>
    %52 = arith.addf %51, %50 : vector<2x96xf32>
    %53 = arith.divf %51, %52 : vector<2x96xf32>
    %54 = vector.extract_strided_slice %47 {offsets = [0, 96], sizes = [2, 32], strides = [1, 1]} : vector<2x128xf32> to vector<2x32xf32>
    %55 = math.tanh %54 : vector<2x32xf32>
    %56 = vector.extract_strided_slice %53 {offsets = [0, 32], sizes = [2, 32], strides = [1, 1]} : vector<2x96xf32> to vector<2x32xf32>
    %57 = arith.mulf %56, %39 : vector<2x32xf32>
    %58 = vector.extract_strided_slice %53 {offsets = [0, 0], sizes = [2, 32], strides = [1, 1]} : vector<2x96xf32> to vector<2x32xf32>
    %59 = arith.mulf %58, %55 : vector<2x32xf32>
    %60 = arith.addf %57, %59 : vector<2x32xf32>
    %61 = vector.extract_strided_slice %53 {offsets = [0, 64], sizes = [2, 32], strides = [1, 1]} : vector<2x96xf32> to vector<2x32xf32>
    %62 = math.tanh %60 : vector<2x32xf32>
    %63 = arith.mulf %61, %62 : vector<2x32xf32>
    %64 = arith.mulf %63, %18 : vector<2x32xf32>
    %cst_12 = arith.constant dense<0.000000e+00> : vector<2x128xf32>
    %65 = tpu.matmul %64, %2, %cst_12 {dimension_numbers = #tpu.dot_dimension_numbers<[1], [0], [0], [1], [0, 0, 1, 1], [], []>} : vector<2x32xf32>, vector<32x128xf32>, vector<2x128xf32> -> vector<2x128xf32>
    %66 = vector.extract_strided_slice %19 {offsets = [4, 0], sizes = [2, 128], strides = [1, 1]} : vector<16x128xf32> to vector<2x128xf32>
    %67 = arith.addf %66, %65 : vector<2x128xf32>
    %68 = arith.addf %67, %5 : vector<2x128xf32>
    %69 = vector.extract_strided_slice %68 {offsets = [0, 0], sizes = [2, 96], strides = [1, 1]} : vector<2x128xf32> to vector<2x96xf32>
    %70 = arith.negf %69 : vector<2x96xf32>
    %71 = math.exp %70 : vector<2x96xf32>
    %cst_13 = arith.constant 1.000000e+00 : f32
    %72 = vector.broadcast %cst_13 : f32 to vector<2x96xf32>
    %73 = arith.addf %72, %71 : vector<2x96xf32>
    %74 = arith.divf %72, %73 : vector<2x96xf32>
    %75 = vector.extract_strided_slice %68 {offsets = [0, 96], sizes = [2, 32], strides = [1, 1]} : vector<2x128xf32> to vector<2x32xf32>
    %76 = math.tanh %75 : vector<2x32xf32>
    %77 = vector.extract_strided_slice %74 {offsets = [0, 32], sizes = [2, 32], strides = [1, 1]} : vector<2x96xf32> to vector<2x32xf32>
    %78 = arith.mulf %77, %60 : vector<2x32xf32>
    %79 = vector.extract_strided_slice %74 {offsets = [0, 0], sizes = [2, 32], strides = [1, 1]} : vector<2x96xf32> to vector<2x32xf32>
    %80 = arith.mulf %79, %76 : vector<2x32xf32>
    %81 = arith.addf %78, %80 : vector<2x32xf32>
    %82 = vector.extract_strided_slice %74 {offsets = [0, 64], sizes = [2, 32], strides = [1, 1]} : vector<2x96xf32> to vector<2x32xf32>
    %83 = math.tanh %81 : vector<2x32xf32>
    %84 = arith.mulf %82, %83 : vector<2x32xf32>
    %85 = arith.mulf %84, %18 : vector<2x32xf32>
    %cst_14 = arith.constant dense<0.000000e+00> : vector<2x128xf32>
    %86 = tpu.matmul %85, %2, %cst_14 {dimension_numbers = #tpu.dot_dimension_numbers<[1], [0], [0], [1], [0, 0, 1, 1], [], []>} : vector<2x32xf32>, vector<32x128xf32>, vector<2x128xf32> -> vector<2x128xf32>
    %87 = vector.extract_strided_slice %19 {offsets = [6, 0], sizes = [2, 128], strides = [1, 1]} : vector<16x128xf32> to vector<2x128xf32>
    %88 = arith.addf %87, %86 : vector<2x128xf32>
    %89 = arith.addf %88, %5 : vector<2x128xf32>
    %90 = vector.extract_strided_slice %89 {offsets = [0, 0], sizes = [2, 96], strides = [1, 1]} : vector<2x128xf32> to vector<2x96xf32>
    %91 = arith.negf %90 : vector<2x96xf32>
    %92 = math.exp %91 : vector<2x96xf32>
    %cst_15 = arith.constant 1.000000e+00 : f32
    %93 = vector.broadcast %cst_15 : f32 to vector<2x96xf32>
    %94 = arith.addf %93, %92 : vector<2x96xf32>
    %95 = arith.divf %93, %94 : vector<2x96xf32>
    %96 = vector.extract_strided_slice %89 {offsets = [0, 96], sizes = [2, 32], strides = [1, 1]} : vector<2x128xf32> to vector<2x32xf32>
    %97 = math.tanh %96 : vector<2x32xf32>
    %98 = vector.extract_strided_slice %95 {offsets = [0, 32], sizes = [2, 32], strides = [1, 1]} : vector<2x96xf32> to vector<2x32xf32>
    %99 = arith.mulf %98, %81 : vector<2x32xf32>
    %100 = vector.extract_strided_slice %95 {offsets = [0, 0], sizes = [2, 32], strides = [1, 1]} : vector<2x96xf32> to vector<2x32xf32>
    %101 = arith.mulf %100, %97 : vector<2x32xf32>
    %102 = arith.addf %99, %101 : vector<2x32xf32>
    %103 = vector.extract_strided_slice %95 {offsets = [0, 64], sizes = [2, 32], strides = [1, 1]} : vector<2x96xf32> to vector<2x32xf32>
    %104 = math.tanh %102 : vector<2x32xf32>
    %105 = arith.mulf %103, %104 : vector<2x32xf32>
    %106 = arith.mulf %105, %18 : vector<2x32xf32>
    %cst_16 = arith.constant dense<0.000000e+00> : vector<2x128xf32>
    %107 = tpu.matmul %106, %2, %cst_16 {dimension_numbers = #tpu.dot_dimension_numbers<[1], [0], [0], [1], [0, 0, 1, 1], [], []>} : vector<2x32xf32>, vector<32x128xf32>, vector<2x128xf32> -> vector<2x128xf32>
    %108 = vector.extract_strided_slice %19 {offsets = [8, 0], sizes = [2, 128], strides = [1, 1]} : vector<16x128xf32> to vector<2x128xf32>
    %109 = arith.addf %108, %107 : vector<2x128xf32>
    %110 = arith.addf %109, %5 : vector<2x128xf32>
    %111 = vector.extract_strided_slice %110 {offsets = [0, 0], sizes = [2, 96], strides = [1, 1]} : vector<2x128xf32> to vector<2x96xf32>
    %112 = arith.negf %111 : vector<2x96xf32>
    %113 = math.exp %112 : vector<2x96xf32>
    %cst_17 = arith.constant 1.000000e+00 : f32
    %114 = vector.broadcast %cst_17 : f32 to vector<2x96xf32>
    %115 = arith.addf %114, %113 : vector<2x96xf32>
    %116 = arith.divf %114, %115 : vector<2x96xf32>
    %117 = vector.extract_strided_slice %110 {offsets = [0, 96], sizes = [2, 32], strides = [1, 1]} : vector<2x128xf32> to vector<2x32xf32>
    %118 = math.tanh %117 : vector<2x32xf32>
    %119 = vector.extract_strided_slice %116 {offsets = [0, 32], sizes = [2, 32], strides = [1, 1]} : vector<2x96xf32> to vector<2x32xf32>
    %120 = arith.mulf %119, %102 : vector<2x32xf32>
    %121 = vector.extract_strided_slice %116 {offsets = [0, 0], sizes = [2, 32], strides = [1, 1]} : vector<2x96xf32> to vector<2x32xf32>
    %122 = arith.mulf %121, %118 : vector<2x32xf32>
    %123 = arith.addf %120, %122 : vector<2x32xf32>
    %124 = vector.extract_strided_slice %116 {offsets = [0, 64], sizes = [2, 32], strides = [1, 1]} : vector<2x96xf32> to vector<2x32xf32>
    %125 = math.tanh %123 : vector<2x32xf32>
    %126 = arith.mulf %124, %125 : vector<2x32xf32>
    %127 = arith.mulf %126, %18 : vector<2x32xf32>
    %cst_18 = arith.constant dense<0.000000e+00> : vector<2x128xf32>
    %128 = tpu.matmul %127, %2, %cst_18 {dimension_numbers = #tpu.dot_dimension_numbers<[1], [0], [0], [1], [0, 0, 1, 1], [], []>} : vector<2x32xf32>, vector<32x128xf32>, vector<2x128xf32> -> vector<2x128xf32>
    %129 = vector.extract_strided_slice %19 {offsets = [10, 0], sizes = [2, 128], strides = [1, 1]} : vector<16x128xf32> to vector<2x128xf32>
    %130 = arith.addf %129, %128 : vector<2x128xf32>
    %131 = arith.addf %130, %5 : vector<2x128xf32>
    %132 = vector.extract_strided_slice %131 {offsets = [0, 0], sizes = [2, 96], strides = [1, 1]} : vector<2x128xf32> to vector<2x96xf32>
    %133 = arith.negf %132 : vector<2x96xf32>
    %134 = math.exp %133 : vector<2x96xf32>
    %cst_19 = arith.constant 1.000000e+00 : f32
    %135 = vector.broadcast %cst_19 : f32 to vector<2x96xf32>
    %136 = arith.addf %135, %134 : vector<2x96xf32>
    %137 = arith.divf %135, %136 : vector<2x96xf32>
    %138 = vector.extract_strided_slice %131 {offsets = [0, 96], sizes = [2, 32], strides = [1, 1]} : vector<2x128xf32> to vector<2x32xf32>
    %139 = math.tanh %138 : vector<2x32xf32>
    %140 = vector.extract_strided_slice %137 {offsets = [0, 32], sizes = [2, 32], strides = [1, 1]} : vector<2x96xf32> to vector<2x32xf32>
    %141 = arith.mulf %140, %123 : vector<2x32xf32>
    %142 = vector.extract_strided_slice %137 {offsets = [0, 0], sizes = [2, 32], strides = [1, 1]} : vector<2x96xf32> to vector<2x32xf32>
    %143 = arith.mulf %142, %139 : vector<2x32xf32>
    %144 = arith.addf %141, %143 : vector<2x32xf32>
    %145 = vector.extract_strided_slice %137 {offsets = [0, 64], sizes = [2, 32], strides = [1, 1]} : vector<2x96xf32> to vector<2x32xf32>
    %146 = math.tanh %144 : vector<2x32xf32>
    %147 = arith.mulf %145, %146 : vector<2x32xf32>
    %148 = arith.mulf %147, %18 : vector<2x32xf32>
    %cst_20 = arith.constant dense<0.000000e+00> : vector<2x128xf32>
    %149 = tpu.matmul %148, %2, %cst_20 {dimension_numbers = #tpu.dot_dimension_numbers<[1], [0], [0], [1], [0, 0, 1, 1], [], []>} : vector<2x32xf32>, vector<32x128xf32>, vector<2x128xf32> -> vector<2x128xf32>
    %150 = vector.extract_strided_slice %19 {offsets = [12, 0], sizes = [2, 128], strides = [1, 1]} : vector<16x128xf32> to vector<2x128xf32>
    %151 = arith.addf %150, %149 : vector<2x128xf32>
    %152 = arith.addf %151, %5 : vector<2x128xf32>
    %153 = vector.extract_strided_slice %152 {offsets = [0, 0], sizes = [2, 96], strides = [1, 1]} : vector<2x128xf32> to vector<2x96xf32>
    %154 = arith.negf %153 : vector<2x96xf32>
    %155 = math.exp %154 : vector<2x96xf32>
    %cst_21 = arith.constant 1.000000e+00 : f32
    %156 = vector.broadcast %cst_21 : f32 to vector<2x96xf32>
    %157 = arith.addf %156, %155 : vector<2x96xf32>
    %158 = arith.divf %156, %157 : vector<2x96xf32>
    %159 = vector.extract_strided_slice %152 {offsets = [0, 96], sizes = [2, 32], strides = [1, 1]} : vector<2x128xf32> to vector<2x32xf32>
    %160 = math.tanh %159 : vector<2x32xf32>
    %161 = vector.extract_strided_slice %158 {offsets = [0, 32], sizes = [2, 32], strides = [1, 1]} : vector<2x96xf32> to vector<2x32xf32>
    %162 = arith.mulf %161, %144 : vector<2x32xf32>
    %163 = vector.extract_strided_slice %158 {offsets = [0, 0], sizes = [2, 32], strides = [1, 1]} : vector<2x96xf32> to vector<2x32xf32>
    %164 = arith.mulf %163, %160 : vector<2x32xf32>
    %165 = arith.addf %162, %164 : vector<2x32xf32>
    %166 = vector.extract_strided_slice %158 {offsets = [0, 64], sizes = [2, 32], strides = [1, 1]} : vector<2x96xf32> to vector<2x32xf32>
    %167 = math.tanh %165 : vector<2x32xf32>
    %168 = arith.mulf %166, %167 : vector<2x32xf32>
    %169 = arith.mulf %168, %18 : vector<2x32xf32>
    %cst_22 = arith.constant dense<0.000000e+00> : vector<2x128xf32>
    %170 = tpu.matmul %169, %2, %cst_22 {dimension_numbers = #tpu.dot_dimension_numbers<[1], [0], [0], [1], [0, 0, 1, 1], [], []>} : vector<2x32xf32>, vector<32x128xf32>, vector<2x128xf32> -> vector<2x128xf32>
    %171 = vector.extract_strided_slice %19 {offsets = [14, 0], sizes = [2, 128], strides = [1, 1]} : vector<16x128xf32> to vector<2x128xf32>
    %172 = arith.addf %171, %170 : vector<2x128xf32>
    %173 = arith.addf %172, %5 : vector<2x128xf32>
    %174 = vector.extract_strided_slice %173 {offsets = [0, 0], sizes = [2, 96], strides = [1, 1]} : vector<2x128xf32> to vector<2x96xf32>
    %175 = arith.negf %174 : vector<2x96xf32>
    %176 = math.exp %175 : vector<2x96xf32>
    %cst_23 = arith.constant 1.000000e+00 : f32
    %177 = vector.broadcast %cst_23 : f32 to vector<2x96xf32>
    %178 = arith.addf %177, %176 : vector<2x96xf32>
    %179 = arith.divf %177, %178 : vector<2x96xf32>
    %180 = vector.extract_strided_slice %173 {offsets = [0, 96], sizes = [2, 32], strides = [1, 1]} : vector<2x128xf32> to vector<2x32xf32>
    %181 = math.tanh %180 : vector<2x32xf32>
    %182 = vector.extract_strided_slice %179 {offsets = [0, 32], sizes = [2, 32], strides = [1, 1]} : vector<2x96xf32> to vector<2x32xf32>
    %183 = arith.mulf %182, %165 : vector<2x32xf32>
    %184 = vector.extract_strided_slice %179 {offsets = [0, 0], sizes = [2, 32], strides = [1, 1]} : vector<2x96xf32> to vector<2x32xf32>
    %185 = arith.mulf %184, %181 : vector<2x32xf32>
    %186 = arith.addf %183, %185 : vector<2x32xf32>
    %187 = vector.extract_strided_slice %179 {offsets = [0, 64], sizes = [2, 32], strides = [1, 1]} : vector<2x96xf32> to vector<2x32xf32>
    %188 = math.tanh %186 : vector<2x32xf32>
    %189 = arith.mulf %187, %188 : vector<2x32xf32>
    %190 = arith.mulf %189, %18 : vector<2x32xf32>
    %191 = vector.extract_strided_slice %43 {offsets = [0, 0], sizes = [1, 32], strides = [1, 1]} : vector<2x32xf32> to vector<1x32xf32>
    %192 = vector.extract_strided_slice %64 {offsets = [0, 0], sizes = [1, 32], strides = [1, 1]} : vector<2x32xf32> to vector<1x32xf32>
    %193 = vector.extract_strided_slice %85 {offsets = [0, 0], sizes = [1, 32], strides = [1, 1]} : vector<2x32xf32> to vector<1x32xf32>
    %194 = vector.extract_strided_slice %106 {offsets = [0, 0], sizes = [1, 32], strides = [1, 1]} : vector<2x32xf32> to vector<1x32xf32>
    %195 = vector.extract_strided_slice %127 {offsets = [0, 0], sizes = [1, 32], strides = [1, 1]} : vector<2x32xf32> to vector<1x32xf32>
    %196 = vector.extract_strided_slice %148 {offsets = [0, 0], sizes = [1, 32], strides = [1, 1]} : vector<2x32xf32> to vector<1x32xf32>
    %197 = vector.extract_strided_slice %169 {offsets = [0, 0], sizes = [1, 32], strides = [1, 1]} : vector<2x32xf32> to vector<1x32xf32>
    %198 = vector.extract_strided_slice %190 {offsets = [0, 0], sizes = [1, 32], strides = [1, 1]} : vector<2x32xf32> to vector<1x32xf32>
    %199 = tpu.concatenate %191, %192, %193, %194, %195, %196, %197, %198 in 0 : vector<1x32xf32>, vector<1x32xf32>, vector<1x32xf32>, vector<1x32xf32>, vector<1x32xf32>, vector<1x32xf32>, vector<1x32xf32>, vector<1x32xf32> -> vector<8x32xf32>
    %200 = vector.extract_strided_slice %190 {offsets = [1, 0], sizes = [1, 32], strides = [1, 1]} : vector<2x32xf32> to vector<1x32xf32>
    %201 = vector.extract_strided_slice %169 {offsets = [1, 0], sizes = [1, 32], strides = [1, 1]} : vector<2x32xf32> to vector<1x32xf32>
    %202 = vector.extract_strided_slice %148 {offsets = [1, 0], sizes = [1, 32], strides = [1, 1]} : vector<2x32xf32> to vector<1x32xf32>
    %203 = vector.extract_strided_slice %127 {offsets = [1, 0], sizes = [1, 32], strides = [1, 1]} : vector<2x32xf32> to vector<1x32xf32>
    %204 = vector.extract_strided_slice %106 {offsets = [1, 0], sizes = [1, 32], strides = [1, 1]} : vector<2x32xf32> to vector<1x32xf32>
    %205 = vector.extract_strided_slice %85 {offsets = [1, 0], sizes = [1, 32], strides = [1, 1]} : vector<2x32xf32> to vector<1x32xf32>
    %206 = vector.extract_strided_slice %64 {offsets = [1, 0], sizes = [1, 32], strides = [1, 1]} : vector<2x32xf32> to vector<1x32xf32>
    %207 = vector.extract_strided_slice %43 {offsets = [1, 0], sizes = [1, 32], strides = [1, 1]} : vector<2x32xf32> to vector<1x32xf32>
    %208 = tpu.concatenate %200, %201, %202, %203, %204, %205, %206, %207 in 0 : vector<1x32xf32>, vector<1x32xf32>, vector<1x32xf32>, vector<1x32xf32>, vector<1x32xf32>, vector<1x32xf32>, vector<1x32xf32>, vector<1x32xf32> -> vector<8x32xf32>
    %209 = arith.addf %199, %208 : vector<8x32xf32>
    %cst_24 = arith.constant dense<0.000000e+00> : vector<8x5xf32>
    %210 = tpu.matmul %209, %3, %cst_24 {dimension_numbers = #tpu.dot_dimension_numbers<[1], [0], [0], [1], [0, 0, 1, 1], [], []>} : vector<8x32xf32>, vector<32x5xf32>, vector<8x5xf32> -> vector<8x5xf32>
    %211 = vector.broadcast %7 : vector<1x5xf32> to vector<8x5xf32>
    %212 = arith.addf %210, %211 : vector<8x5xf32>
    %c0_25 = arith.constant 0 : index
    %c0_26 = arith.constant 0 : index
    %213 = vector.load %arg2[%c0_25, %c0_26] : memref<8x5xf32, #tpu.memory_space<vmem>>, vector<8x5xf32>
    tpu.vector_store %arg2[%c0_25, %c0_26], %212 {strides = array<i32>} : memref<8x5xf32, #tpu.memory_space<vmem>>, vector<8x5xf32>,
    %214 = tpu.iota {dimensions = array<i32: 1>} : vector<1x5xi32>
    %c3_i32 = arith.constant 3 : i32
    %215 = vector.broadcast %c3_i32 : i32 to vector<1x5xi32>
    %216 = arith.cmpi eq, %214, %215 : vector<1x5xi32>
    %cst_27 = arith.constant -1.000000e+04 : f32
    %217 = vector.broadcast %cst_27 : f32 to vector<1x5xf32>
    %cst_28 = arith.constant 0.000000e+00 : f32
    %218 = vector.broadcast %cst_28 : f32 to vector<1x5xf32>
    %219 = arith.select %216, %218, %217 : vector<1x5xi1>, vector<1x5xf32>
    %220 = tpu.iota {dimensions = array<i32: 1>} : vector<5x5xi32>
    %221 = vector.broadcast %219 : vector<1x5xf32> to vector<5x5xf32>
    %222 = arith.addf %221, %8 : vector<5x5xf32>
    %cst_29 = arith.constant dense<0xFF800000> : vector<5xf32>
    %223 = vector.multi_reduction <maximumf>, %222, %cst_29 [1] : vector<5x5xf32> to vector<5xf32>
    %224 = vector.shape_cast %223 : vector<5xf32> to vector<5x1xf32>
    %225 = vector.broadcast %224 : vector<5x1xf32> to vector<5x5xf32>
    %226 = arith.cmpf oeq, %222, %225 : vector<5x5xf32>
    %c5_i32 = arith.constant 5 : i32
    %227 = vector.broadcast %c5_i32 : i32 to vector<5x5xi32>
    %228 = arith.select %226, %220, %227 : vector<5x5xi1>, vector<5x5xi32>
    %cst_30 = arith.constant dense<2147483647> : vector<5xi32>
    %229 = vector.multi_reduction <minsi>, %228, %cst_30 [1] : vector<5x5xi32> to vector<5xi32>
    %230 = vector.shape_cast %229 : vector<5xi32> to vector<1x5xi32>
    %cst_31 = arith.constant dense<0xFF800000> : vector<5xf32>
    %231 = vector.multi_reduction <maximumf>, %222, %cst_31 [1] : vector<5x5xf32> to vector<5xf32>
    %232 = vector.shape_cast %231 : vector<5xf32> to vector<1x5xf32>
    %233 = vector.extract_strided_slice %212 {offsets = [0, 0], sizes = [1, 5], strides = [1, 1]} : vector<8x5xf32> to vector<1x5xf32>
    %234 = arith.addf %232, %233 : vector<1x5xf32>
    %235 = vector.broadcast %234 : vector<1x5xf32> to vector<5x5xf32>
    %236 = arith.addf %235, %8 : vector<5x5xf32>
    %cst_32 = arith.constant dense<0xFF800000> : vector<5xf32>
    %237 = vector.multi_reduction <maximumf>, %236, %cst_32 [1] : vector<5x5xf32> to vector<5xf32>
    %238 = vector.shape_cast %237 : vector<5xf32> to vector<5x1xf32>
    %239 = vector.broadcast %238 : vector<5x1xf32> to vector<5x5xf32>
    %240 = arith.cmpf oeq, %236, %239 : vector<5x5xf32>
    %c5_i32_33 = arith.constant 5 : i32
    %241 = vector.broadcast %c5_i32_33 : i32 to vector<5x5xi32>
    %242 = arith.select %240, %220, %241 : vector<5x5xi1>, vector<5x5xi32>
    %cst_34 = arith.constant dense<2147483647> : vector<5xi32>
    %243 = vector.multi_reduction <minsi>, %242, %cst_34 [1] : vector<5x5xi32> to vector<5xi32>
    %244 = vector.shape_cast %243 : vector<5xi32> to vector<1x5xi32>
    %cst_35 = arith.constant dense<0xFF800000> : vector<5xf32>
    %245 = vector.multi_reduction <maximumf>, %236, %cst_35 [1] : vector<5x5xf32> to vector<5xf32>
    %246 = vector.shape_cast %245 : vector<5xf32> to vector<1x5xf32>
    %247 = vector.extract_strided_slice %212 {offsets = [1, 0], sizes = [1, 5], strides = [1, 1]} : vector<8x5xf32> to vector<1x5xf32>
    %248 = arith.addf %246, %247 : vector<1x5xf32>
    %249 = vector.broadcast %248 : vector<1x5xf32> to vector<5x5xf32>
    %250 = arith.addf %249, %8 : vector<5x5xf32>
    %cst_36 = arith.constant dense<0xFF800000> : vector<5xf32>
    %251 = vector.multi_reduction <maximumf>, %250, %cst_36 [1] : vector<5x5xf32> to vector<5xf32>
    %252 = vector.shape_cast %251 : vector<5xf32> to vector<5x1xf32>
    %253 = vector.broadcast %252 : vector<5x1xf32> to vector<5x5xf32>
    %254 = arith.cmpf oeq, %250, %253 : vector<5x5xf32>
    %c5_i32_37 = arith.constant 5 : i32
    %255 = vector.broadcast %c5_i32_37 : i32 to vector<5x5xi32>
    %256 = arith.select %254, %220, %255 : vector<5x5xi1>, vector<5x5xi32>
    %cst_38 = arith.constant dense<2147483647> : vector<5xi32>
    %257 = vector.multi_reduction <minsi>, %256, %cst_38 [1] : vector<5x5xi32> to vector<5xi32>
    %258 = vector.shape_cast %257 : vector<5xi32> to vector<1x5xi32>
    %cst_39 = arith.constant dense<0xFF800000> : vector<5xf32>
    %259 = vector.multi_reduction <maximumf>, %250, %cst_39 [1] : vector<5x5xf32> to vector<5xf32>
    %260 = vector.shape_cast %259 : vector<5xf32> to vector<1x5xf32>
    %261 = vector.extract_strided_slice %212 {offsets = [2, 0], sizes = [1, 5], strides = [1, 1]} : vector<8x5xf32> to vector<1x5xf32>
    %262 = arith.addf %260, %261 : vector<1x5xf32>
    %263 = vector.broadcast %262 : vector<1x5xf32> to vector<5x5xf32>
    %264 = arith.addf %263, %8 : vector<5x5xf32>
    %cst_40 = arith.constant dense<0xFF800000> : vector<5xf32>
    %265 = vector.multi_reduction <maximumf>, %264, %cst_40 [1] : vector<5x5xf32> to vector<5xf32>
    %266 = vector.shape_cast %265 : vector<5xf32> to vector<5x1xf32>
    %267 = vector.broadcast %266 : vector<5x1xf32> to vector<5x5xf32>
    %268 = arith.cmpf oeq, %264, %267 : vector<5x5xf32>
    %c5_i32_41 = arith.constant 5 : i32
    %269 = vector.broadcast %c5_i32_41 : i32 to vector<5x5xi32>
    %270 = arith.select %268, %220, %269 : vector<5x5xi1>, vector<5x5xi32>
    %cst_42 = arith.constant dense<2147483647> : vector<5xi32>
    %271 = vector.multi_reduction <minsi>, %270, %cst_42 [1] : vector<5x5xi32> to vector<5xi32>
    %272 = vector.shape_cast %271 : vector<5xi32> to vector<1x5xi32>
    %cst_43 = arith.constant dense<0xFF800000> : vector<5xf32>
    %273 = vector.multi_reduction <maximumf>, %264, %cst_43 [1] : vector<5x5xf32> to vector<5xf32>
    %274 = vector.shape_cast %273 : vector<5xf32> to vector<1x5xf32>
    %275 = vector.extract_strided_slice %212 {offsets = [3, 0], sizes = [1, 5], strides = [1, 1]} : vector<8x5xf32> to vector<1x5xf32>
    %276 = arith.addf %274, %275 : vector<1x5xf32>
    %277 = vector.broadcast %276 : vector<1x5xf32> to vector<5x5xf32>
    %278 = arith.addf %277, %8 : vector<5x5xf32>
    %cst_44 = arith.constant dense<0xFF800000> : vector<5xf32>
    %279 = vector.multi_reduction <maximumf>, %278, %cst_44 [1] : vector<5x5xf32> to vector<5xf32>
    %280 = vector.shape_cast %279 : vector<5xf32> to vector<5x1xf32>
    %281 = vector.broadcast %280 : vector<5x1xf32> to vector<5x5xf32>
    %282 = arith.cmpf oeq, %278, %281 : vector<5x5xf32>
    %c5_i32_45 = arith.constant 5 : i32
    %283 = vector.broadcast %c5_i32_45 : i32 to vector<5x5xi32>
    %284 = arith.select %282, %220, %283 : vector<5x5xi1>, vector<5x5xi32>
    %cst_46 = arith.constant dense<2147483647> : vector<5xi32>
    %285 = vector.multi_reduction <minsi>, %284, %cst_46 [1] : vector<5x5xi32> to vector<5xi32>
    %286 = vector.shape_cast %285 : vector<5xi32> to vector<1x5xi32>
    %cst_47 = arith.constant dense<0xFF800000> : vector<5xf32>
    %287 = vector.multi_reduction <maximumf>, %278, %cst_47 [1] : vector<5x5xf32> to vector<5xf32>
    %288 = vector.shape_cast %287 : vector<5xf32> to vector<1x5xf32>
    %289 = vector.extract_strided_slice %212 {offsets = [4, 0], sizes = [1, 5], strides = [1, 1]} : vector<8x5xf32> to vector<1x5xf32>
    %290 = arith.addf %288, %289 : vector<1x5xf32>
    %291 = vector.broadcast %290 : vector<1x5xf32> to vector<5x5xf32>
    %292 = arith.addf %291, %8 : vector<5x5xf32>
    %cst_48 = arith.constant dense<0xFF800000> : vector<5xf32>
    %293 = vector.multi_reduction <maximumf>, %292, %cst_48 [1] : vector<5x5xf32> to vector<5xf32>
    %294 = vector.shape_cast %293 : vector<5xf32> to vector<5x1xf32>
    %295 = vector.broadcast %294 : vector<5x1xf32> to vector<5x5xf32>
    %296 = arith.cmpf oeq, %292, %295 : vector<5x5xf32>
    %c5_i32_49 = arith.constant 5 : i32
    %297 = vector.broadcast %c5_i32_49 : i32 to vector<5x5xi32>
    %298 = arith.select %296, %220, %297 : vector<5x5xi1>, vector<5x5xi32>
    %cst_50 = arith.constant dense<2147483647> : vector<5xi32>
    %299 = vector.multi_reduction <minsi>, %298, %cst_50 [1] : vector<5x5xi32> to vector<5xi32>
    %300 = vector.shape_cast %299 : vector<5xi32> to vector<1x5xi32>
    %cst_51 = arith.constant dense<0xFF800000> : vector<5xf32>
    %301 = vector.multi_reduction <maximumf>, %292, %cst_51 [1] : vector<5x5xf32> to vector<5xf32>
    %302 = vector.shape_cast %301 : vector<5xf32> to vector<1x5xf32>
    %303 = vector.extract_strided_slice %212 {offsets = [5, 0], sizes = [1, 5], strides = [1, 1]} : vector<8x5xf32> to vector<1x5xf32>
    %304 = arith.addf %302, %303 : vector<1x5xf32>
    %305 = vector.broadcast %304 : vector<1x5xf32> to vector<5x5xf32>
    %306 = arith.addf %305, %8 : vector<5x5xf32>
    %cst_52 = arith.constant dense<0xFF800000> : vector<5xf32>
    %307 = vector.multi_reduction <maximumf>, %306, %cst_52 [1] : vector<5x5xf32> to vector<5xf32>
    %308 = vector.shape_cast %307 : vector<5xf32> to vector<5x1xf32>
    %309 = vector.broadcast %308 : vector<5x1xf32> to vector<5x5xf32>
    %310 = arith.cmpf oeq, %306, %309 : vector<5x5xf32>
    %c5_i32_53 = arith.constant 5 : i32
    %311 = vector.broadcast %c5_i32_53 : i32 to vector<5x5xi32>
    %312 = arith.select %310, %220, %311 : vector<5x5xi1>, vector<5x5xi32>
    %cst_54 = arith.constant dense<2147483647> : vector<5xi32>
    %313 = vector.multi_reduction <minsi>, %312, %cst_54 [1] : vector<5x5xi32> to vector<5xi32>
    %314 = vector.shape_cast %313 : vector<5xi32> to vector<1x5xi32>
    %cst_55 = arith.constant dense<0xFF800000> : vector<5xf32>
    %315 = vector.multi_reduction <maximumf>, %306, %cst_55 [1] : vector<5x5xf32> to vector<5xf32>
    %316 = vector.shape_cast %315 : vector<5xf32> to vector<1x5xf32>
    %317 = vector.extract_strided_slice %212 {offsets = [6, 0], sizes = [1, 5], strides = [1, 1]} : vector<8x5xf32> to vector<1x5xf32>
    %318 = arith.addf %316, %317 : vector<1x5xf32>
    %319 = vector.broadcast %318 : vector<1x5xf32> to vector<5x5xf32>
    %320 = arith.addf %319, %8 : vector<5x5xf32>
    %cst_56 = arith.constant dense<0xFF800000> : vector<5xf32>
    %321 = vector.multi_reduction <maximumf>, %320, %cst_56 [1] : vector<5x5xf32> to vector<5xf32>
    %322 = vector.shape_cast %321 : vector<5xf32> to vector<5x1xf32>
    %323 = vector.broadcast %322 : vector<5x1xf32> to vector<5x5xf32>
    %324 = arith.cmpf oeq, %320, %323 : vector<5x5xf32>
    %c5_i32_57 = arith.constant 5 : i32
    %325 = vector.broadcast %c5_i32_57 : i32 to vector<5x5xi32>
    %326 = arith.select %324, %220, %325 : vector<5x5xi1>, vector<5x5xi32>
    %cst_58 = arith.constant dense<2147483647> : vector<5xi32>
    %327 = vector.multi_reduction <minsi>, %326, %cst_58 [1] : vector<5x5xi32> to vector<5xi32>
    %328 = vector.shape_cast %327 : vector<5xi32> to vector<1x5xi32>
    %cst_59 = arith.constant dense<0xFF800000> : vector<5xf32>
    %329 = vector.multi_reduction <maximumf>, %320, %cst_59 [1] : vector<5x5xf32> to vector<5xf32>
    %330 = vector.shape_cast %329 : vector<5xf32> to vector<1x5xf32>
    %331 = vector.extract_strided_slice %212 {offsets = [7, 0], sizes = [1, 5], strides = [1, 1]} : vector<8x5xf32> to vector<1x5xf32>
    %332 = arith.addf %330, %331 : vector<1x5xf32>
    %333 = tpu.concatenate %230, %244, %258, %272, %286, %300, %314, %328 in 0 : vector<1x5xi32>, vector<1x5xi32>, vector<1x5xi32>, vector<1x5xi32>, vector<1x5xi32>, vector<1x5xi32>, vector<1x5xi32>, vector<1x5xi32> -> vector<8x5xi32>
    %c0_60 = arith.constant 0 : index
    %c0_61 = arith.constant 0 : index
    %334 = vector.load %arg3[%c0_60, %c0_61] : memref<8x5xi32, #tpu.memory_space<vmem>>, vector<8x5xi32>
    tpu.vector_store %arg3[%c0_60, %c0_61], %333 {strides = array<i32>} : memref<8x5xi32, #tpu.memory_space<vmem>>, vector<8x5xi32>,
    %335 = vector.extract_strided_slice %8 {offsets = [4, 0], sizes = [1, 5], strides = [1, 1]} : vector<5x5xf32> to vector<1x5xf32>
    %336 = arith.addf %332, %335 : vector<1x5xf32>
    %c0_62 = arith.constant 0 : index
    %c0_63 = arith.constant 0 : index
    %337 = vector.load %arg4[%c0_62, %c0_63] : memref<1x5xf32, #tpu.memory_space<vmem>>, vector<1x5xf32>
    tpu.vector_store %arg4[%c0_62, %c0_63], %336 {strides = array<i32>} : memref<1x5xf32, #tpu.memory_space<vmem>>, vector<1x5xf32>,
    return
  }
}

</mosaic_0001>

<bundles_post_ra>
// kernel: bilstm_crf_forward.1
= control target key start
LH: loop header
LB: loop body
LE: loop exit
PB: predicated region body
PF: predicated region fallthrough
CT: control target
= control target key end

     0   :  { %10 = vsyncpa [#allocation3], 0  ;;  %vm40_vm0 = vcmask 261120   ;;  %v32_v3 = vlaneseq  ;;  %v2959_v5 = vmov 0.0|0.0   ;;  %vm2960_vm1 = vmmov 0   ;;  %s4018_s0 = inlined_call_operand.vmem [shape: f32[16,32], index: 0, kind: input, shape index: {}]   ;;  %s4019_s1 = inlined_call_operand.vmem [shape: f32[106,128], index: 1, kind: input, shape index: {}]   ;;  %s4020_s2 = inlined_call_operand.hbm [shape: f32[8,5], index: 2, kind: output, shape index: {0}]   ;;  %s4021_s3 = inlined_call_operand.hbm [shape: s32[8,5], index: 3, kind: output, shape index: {1}]   ;;  %s4022_s4 = inlined_call_operand.hbm [shape: f32[1,5], index: 4, kind: output, shape index: {2}]  }
   0x1   :  { %v18_v0 = vld [vmem:[%s4019_s1] sm:$0xff]  ;;  %v19_v1 = vld [vmem:[%s4019_s1 + $0x8] sm:$0xff]  ;;  %2759 = vmatprep.subr.bf16.mxu1 %v2959_v5  ;;  %v20_v7 = vld [vmem:[%s4019_s1 + $0x10] sm:$0xff]  ;;  %v2961_v14 = vmov 0.0  }
   0x2   :  { %v22_v2 = vld [vmem:[%s4019_s1 + $0x20] sm:$0xff]  ;;  %v2751_v4 = vpack.c.bf16 %v19_v1, %v18_v0  ;;  %v23_v6 = vld [vmem:[%s4019_s1 + $0x28] sm:$0xff]  ;;  %v21_v8 = vld [vmem:[%s4019_s1 + $0x18] sm:$0xff]  ;;  %2660 = vmatprep.mubr.msk.f32.mxu1 %vm2960_vm1, %v2961_v14  ;;  %v3026_v15 = vand.u32 127, %v32_v3  ;;  %v3028_v16 = vshrl.u32 %v32_v3, 7 }
   0x3   :  { %v3013_v9 = vpack.c.bf16 %v23_v6, %v22_v2  ;;  %v2755_v10 = vpack.c.bf16 %v21_v8, %v20_v7  ;;  %v16_v11 = vld [vmem:[%s4018_s0] sm:$0xff]  ;;  %v24_v12 = vld [vmem:[%s4019_s1 + $0x30] sm:$0xff]  ;;  %v25_v13 = vld [vmem:[%s4019_s1 + $0x38] sm:$0xff] }
   0x4   :  { %2752 = vmatprep.subr.bf16.mxu0 %v2751_v4  ;;  %2649 = vmatprep.mubr.msk.f32.mxu0 %vm40_vm0, %v16_v11 }
   0x5   :  { %11 = vsyncpa [#allocation5], 0  ;;  %2754 = vmatpush3.bf16.msra.mxu0 %v2751_v4  ;;  %2761 = vmatpush3.bf16.msra.mxu1 %v3013_v9  ;;  %v3032_v17 = vpack.c.bf16 %v25_v13, %v24_v12  ;;  %vm36_vm2 = vcmp.eq.s32.totalorder %v3028_v16, 1  ;;  %vm37_vm3 = vcmp.lt.s32.totalorder %v3026_v15, 16  ;;  %v3040_v18 = vld [vmem:[%s4019_s1 + $0x60] sm:$0xff]  ;;  %v17_v21 = vld [vmem:[%s4018_s0 + $0x8] sm:$0xff] }
   0x6   :  { %2756 = vmatprep.subr.bf16.mxu0 %v2755_v10  ;;  %2762 = vmatprep.subr.bf16.mxu1 %v2959_v5  ;;  %vm38_vm4 = vmxor %vm36_vm2, %vm37_vm3  ;;  %s2962_s0 = smov 32   ;;  %v3078_v37 = vrot.slane %v3040_v18, 2  ;;  %s2963_s11 = smov 64   ;;  %v312_v49 = vrot.slane %v3040_v18, 6  ;;  %v426_v11 = vrot.slane %v3040_v18, 4  ;;  %vm1021_vm5 = vcmask 1040384  }
   0x7   :  { %v3043_v19 = vsel %vm38_vm4, 1.0, %v2961_v14  ;;  %vm4044_vm6 = vcmask 1041408   ;;  %vm4043_vm7 = vcmask 1042432   ;;  %vm4042_vm8 = vcmask 1043456  }
   0x8   :  { %v123_v20 = vrot.slane %v3043_v19, 6  ;;  %vm4041_vm9 = vcmask 1044480   ;;  %vm4031_vm10 = vcmask 1045504   ;;  %vm1133_vm11 = vcmp.eq.s32.totalorder %v3026_v15, 3 }
   0x9   :  { %2758 = vmatpush3.bf16.msra.mxu0 %v2755_v10  ;;  %2764 = vmatpush3.bf16.msra.mxu1 %v3032_v17  ;;  %vm1137_vm12 = vcmask 39941   ;;  %vm4030_vm13 = vcmask 1046528   ;;  %vm1141_vm14 = vcmask 33792   ;;  %vm4023_vm15 = vcmask 39936  }
   0xa   :  { %v125_v22 = vmul.f32 %v123_v20, %v3040_v18  ;;  %2765 = vmatprep.subr.bf16.mxu0 %v2959_v5  ;;  %2771 = vmatprep.subr.bf16.mxu1 %v2959_v5  ;;  %vm1366_vm2 = vcmask 1042434   ;;  %vm1368_vm3 = vcmask 1043459   ;;  %vm1370_vm4 = vcmask 1044484  }
   0xc   :  { %2650 = vmatmul.mubr.msk.f32.vlgmr.msra.gmra.mrb[0].mxu0 %vm40_vm0, %v17_v21  ;;  %v127_v23 = vrot.slane %v125_v22, 2 }
   0xd   :  { %2767 = vmatpush3.bf16.msra.mxu0 %v3013_v9  ;;  %2671 = vmatprep.mubr.msk.f32.mxu0 %vm2960_vm1, %v2961_v14 }
   0xe   :  { %2661 = vmatmul.mubr.msk.f32.vlgmr.msra.gmra.mrb[0].mxu1 %vm40_vm0, %v127_v23  ;;  %2768 = vmatprep.subr.bf16.mxu0 %v2959_v5 }
   0xf   :  { %2773 = vmatpush3.bf16.msra.mxu1 %v3013_v9  ;;  %2682 = vmatprep.mubr.msk.f32.mxu1 %vm2960_vm1, %v2961_v14 }
  0x10   :  { %2774 = vmatprep.subr.bf16.mxu1 %v2959_v5 }
  0x11   :  { %2770 = vmatpush3.bf16.msra.mxu0 %v3032_v17 }
  0x12   :  { %2777 = vmatprep.subr.bf16.mxu0 %v2959_v5 }
  0x13   :  { %2776 = vmatpush3.bf16.msra.mxu1 %v3032_v17 }
  0x14   :  { %2783 = vmatprep.subr.bf16.mxu1 %v2959_v5 }
  0xdf   :  { %v3069_v24 = vpop.f32.mrb[0].mxu0 }
  0xe0   :  { %v3071_v25 = vpop.f32.mrb[1].mxu0 }
  0xe1   :  { %v196_v26 = vpop.f32.mrb[0].mxu1 }
  0xe2   :  { %v200_v27 = vadd.f32 %v196_v26, %v3071_v25  ;;  %v2662_v28 = vpop.f32.mrb[1].mxu1 }
  0xe4   :  { %v201_v29 = vadd.f32 %v200_v27, %v3040_v18 }
  0xe6   :  { %2825 = vtanh.f32 %v201_v29  ;;  %v2574_v31 = vmul.f32 -1.442695, %v201_v29 }
  0xe8   :  { %2827 = vpow2.f32 %v2574_v31 }
  0xf0   :  { %v2826_v30 = vpop.eup %2825 }
  0xf1   :  { %214 = vrot.lane.b32.xlu0 %v2826_v30, %s2962_s0  ;;  %v456_v30 = vrot.slane %v3043_v19, 4 }
  0xf2   :  { %v2828_v32 = vpop.eup %2827 }
  0xf3   :  { %v205_v33 = vadd.f32 1.0, %v2828_v32 }
  0xf5   :  { %2829 = vrcp.f32 %v205_v33 }
  0xff   :  { %v2830_v34 = vpop.eup %2829 }
 0x100   :  { %v212_v38 = vmul.f32 %v2830_v34, %v3078_v37 }
 0x163   :  { %v215_v35 = vpop.permute.xlu0 %214 }
 0x164   :  { %v217_v36 = vmul.f32 %v2830_v34, %v215_v35 }
 0x166   :  { %219 = vrot.lane.b32.xlu0 %v217_v36, %s2962_s0 }
 0x1d8   :  { %v220_v39 = vpop.permute.xlu0 %219 }
 0x1d9   :  { %v222_v40 = vadd.f32 %v220_v39, %v212_v38 }
 0x1db   :  { %2831 = vtanh.f32 %v222_v40  ;;  %v323_v60 = vrot.slane %v222_v40, 6 }
 0x1e5   :  { %v2832_v41 = vpop.eup %2831 }
 0x1e6   :  { %225 = vrot.lane.b32.xlu1 %v2832_v41, %s2962_s0 }
 0x1ea   :  { %229 = vrot.lane.b32.xlu1 %v3043_v19, %s2963_s11 }
 0x258   :  { %v226_v42 = vpop.permute.xlu1 %225 }
 0x259   :  { %v228_v43 = vmul.f32 %v2830_v34, %v226_v42 }
 0x25c   :  { %v3084_v44 = vpop.permute.xlu1 %229 }
 0x25d   :  { %v3087_v45 = vmul.f32 %v3084_v44, %v228_v43 }
 0x25f   :  { %234 = vrot.lane.b32.xlu0 %v3087_v45, %s2963_s11 }
 0x2d1   :  { %v235_v46 = vpop.permute.xlu0 %234 }
 0x2d2   :  { %2672 = vmatmul.mubr.msk.f32.vlgmr.msra.gmra.mrb[2].mxu0 %vm40_vm0, %v235_v46 }
 0x2d3   :  { %2779 = vmatpush3.bf16.msra.mxu0 %v3013_v9  ;;  %2693 = vmatprep.mubr.msk.f32.mxu0 %vm2960_vm1, %v2961_v14 }
 0x2d4   :  { %2780 = vmatprep.subr.bf16.mxu0 %v2959_v5 }
 0x2d7   :  { %2782 = vmatpush3.bf16.msra.mxu0 %v3032_v17 }
 0x2d8   :  { %2789 = vmatprep.subr.bf16.mxu0 %v2959_v5 }
 0x3a5   :  { %v304_v47 = vpop.f32.mrb[2].mxu0 }
 0x3a6   :  { %v309_v48 = vrot.slane %v304_v47, 6  ;;  %v2673_v50 = vpop.f32.mrb[3].mxu0 }
 0x3a8   :  { %v311_v51 = vadd.f32 %v309_v48, %v3071_v25 }
 0x3aa   :  { %v314_v52 = vadd.f32 %v312_v49, %v311_v51 }
 0x3ac   :  { %2833 = vtanh.f32 %v314_v52  ;;  %v2576_v54 = vmul.f32 -1.442695, %v314_v52 }
 0x3ae   :  { %2835 = vpow2.f32 %v2576_v54 }
 0x3b6   :  { %v2834_v53 = vpop.eup %2833 }
 0x3b7   :  { %327 = vrot.lane.b32.xlu1 %v2834_v53, %s2962_s0 }
 0x3b8   :  { %v2836_v55 = vpop.eup %2835 }
 0x3b9   :  { %v318_v56 = vadd.f32 1.0, %v2836_v55 }
 0x3bb   :  { %2837 = vrcp.f32 %v318_v56 }
 0x3c5   :  { %v2838_v57 = vpop.eup %2837 }
 0x3c6   :  { %v325_v61 = vmul.f32 %v2838_v57, %v323_v60 }
 0x429   :  { %v328_v58 = vpop.permute.xlu1 %327 }
 0x42a   :  { %v330_v59 = vmul.f32 %v2838_v57, %v328_v58  ;;  %v569_v58 = vrot.slane %v3043_v19, 2 }
 0x42c   :  { %332 = vrot.lane.b32.xlu0 %v330_v59, %s2962_s0 }
 0x430   :  { %342 = vrot.lane.b32.xlu0 %v123_v20, %s2963_s11 }
 0x49e   :  { %v333_v62 = vpop.permute.xlu0 %332 }
 0x49f   :  { %v335_v63 = vadd.f32 %v333_v62, %v325_v61 }
 0x4a1   :  { %2839 = vtanh.f32 %v335_v63  ;;  %v437_v31 = vrot.slane %v335_v63, 6 }
 0x4a2   :  { %v3108_v2 = vpop.permute.xlu0 %342 }
 0x4ab   :  { %v2840_v0 = vpop.eup %2839 }
 0x4ac   :  { %338 = vrot.lane.b32.xlu1 %v2840_v0, %s2962_s0 }
 0x51e   :  { %v339_v1 = vpop.permute.xlu1 %338 }
 0x51f   :  { %v341_v3 = vmul.f32 %v2838_v57, %v339_v1 }
 0x521   :  { %v3111_v4 = vmul.f32 %v3108_v2, %v341_v3 }
 0x523   :  { %v347_v6 = vrot.slane %v3111_v4, 2  ;;  %v1006_v1 = vrot.slane %v3111_v4, 1 }
 0x525   :  { %348 = vrot.lane.b32.xlu1 %v347_v6, %s2963_s11 }
 0x597   :  { %v349_v7 = vpop.permute.xlu1 %348 }
 0x598   :  { %2683 = vmatmul.mubr.msk.f32.vlgmr.msra.gmra.mrb[2].mxu1 %vm40_vm0, %v349_v7  ;;  %v1022_v7 = vsel %vm1021_vm5, %v3087_v45, %v1006_v1 }
 0x599   :  { %2785 = vmatpush3.bf16.msra.mxu1 %v3013_v9  ;;  %2704 = vmatprep.mubr.msk.f32.mxu1 %vm2960_vm1, %v2961_v14 }
 0x59a   :  { %2786 = vmatprep.subr.bf16.mxu1 %v2959_v5 }
 0x59d   :  { %2788 = vmatpush3.bf16.msra.mxu1 %v3032_v17 }
 0x59e   :  { %2795 = vmatprep.subr.bf16.mxu1 %v2959_v5 }
 0x66b   :  { %v418_v8 = vpop.f32.mrb[2].mxu1 }
 0x66c   :  { %v423_v10 = vrot.slane %v418_v8, 4  ;;  %v2684_v12 = vpop.f32.mrb[3].mxu1 }
 0x66e   :  { %v425_v13 = vadd.f32 %v423_v10, %v3071_v25 }
 0x670   :  { %v428_v20 = vadd.f32 %v426_v11, %v425_v13 }
 0x672   :  { %2841 = vtanh.f32 %v428_v20  ;;  %v2578_v22 = vmul.f32 -1.442695, %v428_v20 }
 0x674   :  { %2843 = vpow2.f32 %v2578_v22 }
 0x67c   :  { %v2842_v21 = vpop.eup %2841 }
 0x67d   :  { %441 = vrot.lane.b32.xlu0 %v2842_v21, %s2962_s0 }
 0x67e   :  { %v2844_v23 = vpop.eup %2843 }
 0x67f   :  { %v432_v26 = vadd.f32 1.0, %v2844_v23 }
 0x681   :  { %2845 = vrcp.f32 %v432_v26 }
 0x68b   :  { %v2846_v27 = vpop.eup %2845 }
 0x68c   :  { %v439_v32 = vmul.f32 %v2846_v27, %v437_v31 }
 0x6ef   :  { %v442_v28 = vpop.permute.xlu0 %441 }
 0x6f0   :  { %v444_v29 = vmul.f32 %v2846_v27, %v442_v28 }
 0x6f2   :  { %446 = vrot.lane.b32.xlu1 %v444_v29, %s2962_s0 }
 0x6f6   :  { %457 = vrot.lane.b32.xlu1 %v456_v30, %s2963_s11 }
 0x764   :  { %v447_v33 = vpop.permute.xlu1 %446 }
 0x765   :  { %v449_v34 = vadd.f32 %v447_v33, %v439_v32 }
 0x767   :  { %2847 = vtanh.f32 %v449_v34 }
 0x768   :  { %v3131_v38 = vpop.permute.xlu1 %457 }
 0x771   :  { %v2848_v35 = vpop.eup %2847 }
 0x772   :  { %452 = vrot.lane.b32.xlu0 %v2848_v35, %s2962_s0 }
 0x7e4   :  { %v453_v36 = vpop.permute.xlu0 %452 }
 0x7e5   :  { %v455_v39 = vmul.f32 %v2846_v27, %v453_v36 }
 0x7e7   :  { %v3134_v40 = vmul.f32 %v3131_v38, %v455_v39 }
 0x7e9   :  { %v462_v41 = vrot.slane %v3134_v40, 4  ;;  %v1008_v6 = vrot.slane %v3134_v40, 2 }
 0x7eb   :  { %463 = vrot.lane.b32.xlu0 %v462_v41, %s2963_s11  ;;  %v1024_v12 = vsel %vm4044_vm6, %v1022_v7, %v1008_v6 }
 0x85d   :  { %v464_v42 = vpop.permute.xlu0 %463 }
 0x85e   :  { %2694 = vmatmul.mubr.msk.f32.vlgmr.msra.gmra.mrb[4].mxu0 %vm40_vm0, %v464_v42 }
 0x85f   :  { %2791 = vmatpush3.bf16.msra.mxu0 %v3013_v9  ;;  %2715 = vmatprep.mubr.msk.f32.mxu0 %vm2960_vm1, %v2961_v14 }
 0x860   :  { %2792 = vmatprep.subr.bf16.mxu0 %v2959_v5 }
 0x863   :  { %2794 = vmatpush3.bf16.msra.mxu0 %v3032_v17 }
 0x864   :  { %2801 = vmatprep.subr.bf16.mxu0 %v2959_v5 }
 0x931   :  { %v533_v43 = vpop.f32.mrb[4].mxu0 }
 0x932   :  { %v538_v46 = vrot.slane %v533_v43, 2  ;;  %v2695_v47 = vpop.f32.mrb[5].mxu0 }
 0x934   :  { %v540_v48 = vadd.f32 %v538_v46, %v3071_v25  ;;  %v550_v25 = vrot.slane %v449_v34, 6 }
 0x936   :  { %v541_v50 = vadd.f32 %v540_v48, %v3078_v37 }
 0x938   :  { %2849 = vtanh.f32 %v541_v50  ;;  %v2580_v52 = vmul.f32 -1.442695, %v541_v50 }
 0x93a   :  { %2851 = vpow2.f32 %v2580_v52 }
 0x942   :  { %v2850_v51 = vpop.eup %2849 }
 0x943   :  { %554 = vrot.lane.b32.xlu1 %v2850_v51, %s2962_s0 }
 0x944   :  { %v2852_v53 = vpop.eup %2851 }
 0x945   :  { %v545_v54 = vadd.f32 1.0, %v2852_v53 }
 0x947   :  { %2853 = vrcp.f32 %v545_v54 }
 0x951   :  { %v2854_v55 = vpop.eup %2853 }
 0x952   :  { %v552_v59 = vmul.f32 %v2854_v55, %v550_v25 }
 0x9b5   :  { %v555_v56 = vpop.permute.xlu1 %554 }
 0x9b6   :  { %v557_v57 = vmul.f32 %v2854_v55, %v555_v56 }
 0x9b8   :  { %559 = vrot.lane.b32.xlu0 %v557_v57, %s2962_s0 }
 0x9bc   :  { %570 = vrot.lane.b32.xlu0 %v569_v58, %s2963_s11 }
 0xa2a   :  { %v560_v60 = vpop.permute.xlu0 %559 }
 0xa2b   :  { %v562_v61 = vadd.f32 %v560_v60, %v552_v59 }
 0xa2d   :  { %2855 = vtanh.f32 %v562_v61  ;;  %v660_v34 = vrot.slane %v562_v61, 6 }
 0xa2e   :  { %v3152_v0 = vpop.permute.xlu0 %570 }
 0xa37   :  { %v2856_v62 = vpop.eup %2855 }
 0xa38   :  { %565 = vrot.lane.b32.xlu1 %v2856_v62, %s2962_s0 }
 0xaaa   :  { %v566_v63 = vpop.permute.xlu1 %565 }
 0xaab   :  { %v568_v3 = vmul.f32 %v2854_v55, %v566_v63 }
 0xaad   :  { %v3157_v19 = vmul.f32 %v3152_v0, %v568_v3 }
 0xaaf   :  { %v1010_v8 = vrot.slane %v3157_v19, 3  ;;  %v575_v10 = vrot.slane %v3157_v19, 6 }
 0xab1   :  { %v1026_v13 = vsel %vm4043_vm7, %v1024_v12, %v1010_v8  ;;  %576 = vrot.lane.b32.xlu1 %v575_v10, %s2963_s11 }
 0xb23   :  { %v577_v20 = vpop.permute.xlu1 %576 }
 0xb24   :  { %2705 = vmatmul.mubr.msk.f32.vlgmr.msra.gmra.mrb[4].mxu1 %vm40_vm0, %v577_v20 }
 0xb25   :  { %2797 = vmatpush3.bf16.msra.mxu1 %v3013_v9  ;;  %2726 = vmatprep.mubr.msk.f32.mxu1 %vm2960_vm1, %v2961_v14 }
 0xb26   :  { %2798 = vmatprep.subr.bf16.mxu1 %v2959_v5 }
 0xb29   :  { %2800 = vmatpush3.bf16.msra.mxu1 %v3032_v17 }
 0xb2a   :  { %2807 = vmatprep.subr.bf16.mxu1 %v2959_v5 }
 0xbf7   :  { %v646_v21 = vpop.f32.mrb[4].mxu1 }
 0xbf8   :  { %v650_v22 = vadd.f32 %v3069_v24, %v646_v21  ;;  %v2706_v23 = vpop.f32.mrb[5].mxu1 }
 0xbfa   :  { %v651_v26 = vadd.f32 %v650_v22, %v3040_v18 }
 0xbfc   :  { %2857 = vtanh.f32 %v651_v26  ;;  %v2582_v28 = vmul.f32 -1.442695, %v651_v26 }
 0xbfe   :  { %2859 = vpow2.f32 %v2582_v28 }
 0xc06   :  { %v2858_v27 = vpop.eup %2857 }
 0xc07   :  { %664 = vrot.lane.b32.xlu0 %v2858_v27, %s2962_s0 }
 0xc08   :  { %v2860_v29 = vpop.eup %2859 }
 0xc09   :  { %v655_v30 = vadd.f32 1.0, %v2860_v29 }
 0xc0b   :  { %2861 = vrcp.f32 %v655_v30 }
 0xc15   :  { %v2862_v31 = vpop.eup %2861 }
 0xc16   :  { %v662_v35 = vmul.f32 %v2862_v31, %v660_v34 }
 0xc79   :  { %v665_v32 = vpop.permute.xlu0 %664 }
 0xc7a   :  { %v667_v33 = vmul.f32 %v2862_v31, %v665_v32 }
 0xc7c   :  { %669 = vrot.lane.b32.xlu1 %v667_v33, %s2962_s0 }
 0xcee   :  { %v670_v36 = vpop.permute.xlu1 %669 }
 0xcef   :  { %v672_v39 = vadd.f32 %v670_v36, %v662_v35 }
 0xcf1   :  { %2863 = vtanh.f32 %v672_v39  ;;  %v768_v59 = vrot.slane %v672_v39, 6 }
 0xcfb   :  { %v2864_v41 = vpop.eup %2863 }
 0xcfc   :  { %675 = vrot.lane.b32.xlu0 %v2864_v41, %s2962_s0 }
 0xd6e   :  { %v676_v42 = vpop.permute.xlu0 %675 }
 0xd6f   :  { %v678_v43 = vmul.f32 %v2862_v31, %v676_v42 }
 0xd71   :  { %v3181_v46 = vmul.f32 %v678_v43, %v3084_v44 }
 0xd73   :  { %v1012_v47 = vrot.slane %v3181_v46, 4  ;;  %681 = vrot.lane.b32.xlu1 %v3181_v46, %s2963_s11 }
 0xd75   :  { %v1028_v48 = vsel %vm4042_vm8, %v1026_v13, %v1012_v47 }
 0xde5   :  { %v682_v50 = vpop.permute.xlu1 %681 }
 0xde6   :  { %2716 = vmatmul.mubr.msk.f32.vlgmr.msra.gmra.mrb[6].mxu0 %vm40_vm0, %v682_v50 }
 0xde7   :  { %2803 = vmatpush3.bf16.msra.mxu0 %v3013_v9  ;;  %2737 = vmatprep.mubr.msk.f32.mxu0 %vm2960_vm1, %v2961_v14 }
 0xde8   :  { %2804 = vmatprep.subr.bf16.mxu0 %v2959_v5 }
 0xdeb   :  { %2806 = vmatpush3.bf16.msra.mxu0 %v3032_v17 }
 0xeb9   :  { %v751_v44 = vpop.f32.mrb[6].mxu0 }
 0xeba   :  { %v756_v51 = vrot.slane %v751_v44, 6  ;;  %v2717_v52 = vpop.f32.mrb[7].mxu0 }
 0xebc   :  { %v758_v53 = vadd.f32 %v3069_v24, %v756_v51 }
 0xebe   :  { %v759_v54 = vadd.f32 %v758_v53, %v312_v49 }
 0xec0   :  { %2865 = vtanh.f32 %v759_v54  ;;  %v2584_v9 = vmul.f32 -1.442695, %v759_v54 }
 0xec2   :  { %2867 = vpow2.f32 %v2584_v9 }
 0xeca   :  { %v2866_v55 = vpop.eup %2865 }
 0xecb   :  { %772 = vrot.lane.b32.xlu0 %v2866_v55, %s2962_s0 }
 0xecc   :  { %v2868_v56 = vpop.eup %2867 }
 0xecd   :  { %v763_v57 = vadd.f32 1.0, %v2868_v56 }
 0xecf   :  { %2869 = vrcp.f32 %v763_v57 }
 0xed9   :  { %v2870_v58 = vpop.eup %2869 }
 0xeda   :  { %v770_v60 = vmul.f32 %v2870_v58, %v768_v59  ;;  %v26_v59 = vld [vmem:[%s4019_s1 + $0x40] sm:$0xff] }
 0xf3d   :  { %v773_v25 = vpop.permute.xlu0 %772 }
 0xf3e   :  { %v775_v17 = vmul.f32 %v2870_v58, %v773_v25 }
 0xf40   :  { %777 = vrot.lane.b32.xlu1 %v775_v17, %s2962_s0 }
 0xfb2   :  { %v778_v61 = vpop.permute.xlu1 %777 }
 0xfb3   :  { %v780_v62 = vadd.f32 %v778_v61, %v770_v60  ;;  %v27_v60 = vld [vmem:[%s4019_s1 + $0x48] sm:$0xff]  ;;  %v28_v61 = vld [vmem:[%s4019_s1 + $0x50] sm:$0xff] }
 0xfb5   :  { %2871 = vtanh.f32 %v780_v62  ;;  %v877_v31 = vrot.slane %v780_v62, 6  ;;  %v2808_v62 = vpack.c.bf16 %v27_v60, %v26_v59 }
 0xfbf   :  { %v2872_v49 = vpop.eup %2871 }
 0xfc0   :  { %783 = vrot.lane.b32.xlu0 %v2872_v49, %s2962_s0  ;;  %v29_v49 = vld [vmem:[%s4019_s1 + $0x58] sm:$0xff] }
0x1032   :  { %v784_v63 = vpop.permute.xlu0 %783 }
0x1033   :  { %v786_v1 = vmul.f32 %v2870_v58, %v784_v63  ;;  %v2811_v63 = vpack.c.bf16 %v29_v49, %v28_v61 }
0x1035   :  { %v3200_v3 = vmul.f32 %v786_v1, %v3108_v2 }
0x1037   :  { %v1014_v6 = vrot.slane %v3200_v3, 5  ;;  %v789_v7 = vrot.slane %v3200_v3, 2 }
0x1039   :  { %790 = vrot.lane.b32.xlu1 %v789_v7, %s2963_s11  ;;  %v1030_v10 = vsel %vm4041_vm9, %v1028_v48, %v1014_v6 }
0x10ab   :  { %v791_v12 = vpop.permute.xlu1 %790 }
0x10ac   :  { %2727 = vmatmul.mubr.msk.f32.vlgmr.msra.gmra.mrb[6].mxu1 %vm40_vm0, %v791_v12 }
0x10ad   :  { %2748 = vmatprep.mubr.msk.f32.mxu1 %vm2960_vm1, %v2961_v14  ;;  %2809 = vmatpush3.bf16.msra.mxu1 %v2808_v62  ;;  %vm1364_vm1 = vcmask 1041409  }
0x10ae   :  { %2810 = vmatprep.subr.bf16.mxu1 %v2959_v5 }
0x10b1   :  { %2812 = vmatpush3.bf16.msra.mxu1 %v2811_v63 }
0x117f   :  { %v860_v13 = vpop.f32.mrb[6].mxu1 }
0x1180   :  { %v865_v20 = vrot.slane %v860_v13, 4  ;;  %v2728_v21 = vpop.f32.mrb[7].mxu1 }
0x1181   :  { %v1036_v21 = vrot.slane %v3200_v3, 1  ;;  %v1042_v3 = vrot.slane %v3087_v45, 2  ;;  %v4025_v45 = vsub.s32 6, %v3028_v16 }
0x1182   :  { %v867_v2 = vadd.f32 %v3069_v24, %v865_v20 }
0x1184   :  { %v868_v22 = vadd.f32 %v867_v2, %v426_v11  ;;  %v1038_v2 = vrot.slane %v3181_v46, 6 }
0x1186   :  { %2873 = vtanh.f32 %v868_v22  ;;  %v2586_v26 = vmul.f32 -1.442695, %v868_v22 }
0x1188   :  { %2875 = vpow2.f32 %v2586_v26  ;;  %v1040_v26 = vrot.slane %v3111_v4, 5  ;;  %v1199_v4 = vsub.s32 5, %v3028_v16 }
0x118a   :  { %v3264_v19 = vrot.slane %v3040_v18, %v1199_v4 }
0x1190   :  { %v2874_v23 = vpop.eup %2873 }
0x1191   :  { %881 = vrot.lane.b32.xlu0 %v2874_v23, %s2962_s0 }
0x1192   :  { %v2876_v27 = vpop.eup %2875 }
0x1193   :  { %v872_v28 = vadd.f32 1.0, %v2876_v27 }
0x1195   :  { %2877 = vrcp.f32 %v872_v28 }
0x119f   :  { %v2878_v29 = vpop.eup %2877 }
0x11a0   :  { %v879_v32 = vmul.f32 %v2878_v29, %v877_v31 }
0x1203   :  { %v882_v30 = vpop.permute.xlu0 %881 }
0x1204   :  { %v884_v14 = vmul.f32 %v2878_v29, %v882_v30 }
0x1206   :  { %886 = vrot.lane.b32.xlu1 %v884_v14, %s2962_s0 }
0x1278   :  { %v887_v33 = vpop.permute.xlu1 %886 }
0x1279   :  { %v889_v34 = vadd.f32 %v887_v33, %v879_v32 }
0x127b   :  { %2879 = vtanh.f32 %v889_v34  ;;  %v986_v58 = vrot.slane %v889_v34, 6  ;;  %v4024_v34 = vsub.s32 7, %v3028_v16 }
0x1285   :  { %v2880_v11 = vpop.eup %2879 }
0x1286   :  { %892 = vrot.lane.b32.xlu0 %v2880_v11, %s2962_s0  ;;  %v3288_v11 = vrot.slane %v3040_v18, %v4024_v34 }
0x12f8   :  { %v893_v35 = vpop.permute.xlu0 %892 }
0x12f9   :  { %v895_v36 = vmul.f32 %v2878_v29, %v893_v35  ;;  %v3293_v35 = vsub.s32 4, %v3028_v16 }
0x12fb   :  { %v896_v39 = vmul.f32 %v895_v36, %v3131_v38  ;;  %v2965_v36 = vmov 0  }
0x12fc   :  { %2824 = vset.pattern.permute.xlu1 %v2965_v36  ;;  %2823 = vset.pattern.permute.xlu0 %v2965_v36 }
0x12fd   :  { %v1016_v41 = vrot.slane %v896_v39, 6  ;;  %v898_v42 = vrot.slane %v896_v39, 4  ;;  %v1055_v39 = vrot.slane %v3040_v18, %v3293_v35 }
0x12ff   :  { %899 = vrot.lane.b32.xlu1 %v898_v42, %s2963_s11  ;;  %v1032_v43 = vsel %vm4031_vm10, %v1030_v10, %v1016_v41  ;;  %v2964_v10 = vmov -10000.0   ;;  %v3298_v41 = vsub.s32 0, %v3028_v16 }
0x1300   :  { %v1134_v12 = vsel %vm1133_vm11, 0.0, %v2964_v10  ;;  %vm1373_vm11 = vcmask 77864  }
0x1301   :  { %v3240_v20 = vadd.f32 %v1134_v12, %v3040_v18 }
0x1303   :  { %v1138_v22 = vsel %vm1137_vm12, %v3240_v20, -inf }
0x1371   :  { %v900_v47 = vpop.permute.xlu1 %899 }
0x1372   :  { %2738 = vmatmul.mubr.msk.f32.vlgmr.msra.gmra.mrb[8].mxu0 %vm40_vm0, %v900_v47 }
0x1445   :  { %v969_v48 = vpop.f32.mrb[8].mxu0 }
0x1446   :  { %v974_v50 = vrot.slane %v969_v48, 2  ;;  %v2739_v44 = vpop.f32.mrb[9].mxu0 }
0x1448   :  { %v976_v51 = vadd.f32 %v3069_v24, %v974_v50 }
0x144a   :  { %v977_v52 = vadd.f32 %v976_v51, %v3078_v37 }
0x144c   :  { %2881 = vtanh.f32 %v977_v52  ;;  %v2588_v38 = vmul.f32 -1.442695, %v977_v52 }
0x144e   :  { %2883 = vpow2.f32 %v2588_v38 }
0x1456   :  { %v2882_v53 = vpop.eup %2881 }
0x1457   :  { %990 = vrot.lane.b32.xlu0 %v2882_v53, %s2962_s0 }
0x1458   :  { %v2884_v54 = vpop.eup %2883 }
0x1459   :  { %v981_v55 = vadd.f32 1.0, %v2884_v54 }
0x145b   :  { %2885 = vrcp.f32 %v981_v55 }
0x1465   :  { %v2886_v9 = vpop.eup %2885 }
0x1466   :  { %v988_v25 = vmul.f32 %v2886_v9, %v986_v58 }
0x14c9   :  { %v991_v56 = vpop.permute.xlu0 %990 }
0x14ca   :  { %v993_v57 = vmul.f32 %v2886_v9, %v991_v56 }
0x14cc   :  { %995 = vrot.lane.b32.xlu1 %v993_v57, %s2962_s0 }
0x153e   :  { %v996_v17 = vpop.permute.xlu1 %995 }
0x153f   :  { %v998_v24 = vadd.f32 %v996_v17, %v988_v25 }
0x1541   :  { %2887 = vtanh.f32 %v998_v24 }
0x154b   :  { %v2888_v37 = vpop.eup %2887 }
0x154c   :  { %1001 = vrot.lane.b32.xlu0 %v2888_v37, %s2962_s0 }
0x156b   :  { %1139 = vmax.xlane.f32.xlu0 %v1138_v22  ;;  %v1321_v22 = vadd.s32 4294967288, %v3026_v15 }
0x1581   :  { %1203 = vbcast.lane.b32.xlu0 %v3264_v19, 507 }
0x15be   :  { %v1002_v1 = vpop.permute.xlu0 %1001 }
0x15bf   :  { %v1004_v6 = vmul.f32 %v2886_v9, %v1002_v1 }
0x15c1   :  { %v1005_v7 = vmul.f32 %v1004_v6, %v3152_v0 }
0x15c3   :  { %v1019_v13 = vrot.slane %v1005_v7, 7 }
0x15c5   :  { %v1044_v5 = vsel %vm1021_vm5, %v1019_v13, %v898_v42  ;;  %v1034_v29 = vsel %vm4030_vm13, %v1032_v43, %v1019_v13 }
0x15c6   :  { %v1045_v0 = vsel %vm4044_vm6, %v1044_v5, %v1036_v21 }
0x15c7   :  { %v1046_v23 = vsel %vm4043_vm7, %v1045_v0, %v1038_v2 }
0x15c8   :  { %v1047_v27 = vsel %vm4042_vm8, %v1046_v23, %v1010_v8  ;;  %v31_v8 = vld [vmem:[%s4019_s1 + $0x68] sm:$0x3]  ;;  %s2966_s1 = smov [#allocation2]  }
0x15c9   :  { %v1048_v46 = vsel %vm4041_vm9, %v1047_v27, %v3134_v40  ;;  %v3271_v40 = vrot.slane %v3040_v18, %v4025_v45  ;;  %v3277_v31 = vadd.f32 %v1134_v12, %v31_v8  ;;  %v1236_v50 = vrot.slane %v31_v8, %v3298_v41  ;;  %s2536_s22 = sshll.u32 %s2966_s1, 4  ;;  %s2537_s22 = int_to_ptr.vmem [resolvable:$true] %s2536_s22 }
0x15ca   :  { %v1049_v28 = vsel %vm4031_vm10, %v1048_v46, %v1040_v26  ;;  %v3308_v18 = vsub.s32 1, %v3028_v16  ;;  %v3355_v26 = vsub.s32 %v3026_v15, %v3028_v16  ;;  %v3358_v27 = vsub.s32 %v1321_v22, %v3028_v16  ;;  %s2889_s23 = scalar_lea.vmem %s2537_s22, 128  ;;  %p2894_p1 = scmp.lt.s32.totalorder %s2537_s22, %s2537_s22 }
0x15cb   :  { %v1050_v30 = vsel %vm4030_vm13, %v1049_v28, %v1042_v3  ;;  %1215 = vbcast.lane.b32.xlu0 %v3271_v40, 507  ;;  %v1142_v32 = vsel %vm1141_vm14, %v3277_v31, -inf  ;;  %p2890_p0 = scmp.ne.s32.totalorder %s2537_s22, %s2889_s23  ;;  %p2895_p2 = scmp.lt.s32.totalorder %s2889_s23, %s2889_s23 }
0x15cc   :  { %v1051_v14 = vadd.f32 %v1050_v30, %v1034_v29  ;;  %v1248_v44 = vrot.slane %v31_v8, %v3308_v18 }
0x15cd   :  { %p2896_p3 = por %p2895_p2, %p2894_p1 }
0x15ce   :  { %1057 = vrot.lane.b32.xlu1 %v1051_v14, %s2963_s11 }
0x15cf   :  { %1227 = vbcast.lane.b32.xlu0 %v3288_v11, 507  ;;  %p2897_p4 = pnand %p2896_p3, %p2890_p0 }
0x15f2   :  { %1143 = vmax.xlane.f32.xlu1 %v1142_v32 }
0x15f8   :  { %v3311_v51 = vpop.xlane.xlu0 %1139 }
0x15f9   :  { %vm1145_vm13 = vcmp.eq.f32.partialorder %v3240_v20, %v3311_v51 }
0x15fc   :  { %v1204_v53 = vpop.permute.xlu0 %1203 }
0x1603   :  { %1207 = vbcast.lane.b32.xlu1 %v3264_v19, 259 }
0x1607   :  { %1219 = vbcast.lane.b32.xlu1 %v3271_v40, 259 }
0x160b   :  { %1231 = vbcast.lane.b32.xlu1 %v3288_v11, 259 }
0x163d   :  { %v1216_v54 = vpop.permute.xlu0 %1215 }
0x1640   :  { %v1058_v33 = vpop.permute.xlu1 %1057 }
0x1641   :  { %2749 = vmatmul.mubr.msk.f32.vlgmr.msra.gmra.mrb[8].mxu1 %vm40_vm0, %v1058_v33  ;;  %v1228_v9 = vpop.permute.xlu0 %1227  ;;  %vm1326_vm0 = vcmask 130112  }
0x167f   :  { %v3313_v52 = vpop.xlane.xlu1 %1143 }
0x1680   :  { %vm1146_vm10 = vcmp.eq.f32.partialorder %v3277_v31, %v3313_v52 }
0x1683   :  { %v1208_v38 = vpop.permute.xlu1 %1207 }
0x1687   :  { %v1220_v55 = vpop.permute.xlu1 %1219 }
0x168b   :  { %v1232_v56 = vpop.permute.xlu1 %1231 }
0x1714   :  { %v1127_v42 = vpop.f32.mrb[8].mxu1 }
0x1715   :  { %v3300_v43 = vadd.f32 %v1127_v42, %v1055_v39  ;;  %v2750_v47 = vpop.f32.mrb[9].mxu1 }
0x1717   :  { %v1183_v48 = vrot.slane %v3300_v43, %v3298_v41  ;;  %1132 = vst.msk [vmem:[#allocation2] sm:$0xff] %vm4023_vm15, %v3300_v43  ;;  %v1528_v21 = vrot.slane %v3300_v43, %v3308_v18  ;;  %vm4045_vm15 = vcmask 36864  }
0x1719   :  { %1190 = vbcast.lane.b32.xlu1 %v1183_v48, 259  ;;  %1186 = vbcast.lane.b32.xlu0 %v1183_v48, 507 }
0x171d   :  { %1243 = vbcast.lane.b32.xlu1 %v1236_v50, 259  ;;  %1239 = vbcast.lane.b32.xlu0 %v1236_v50, 507 }
0x1721   :  { %1255 = vbcast.lane.b32.xlu1 %v1248_v44, 259  ;;  %1251 = vbcast.lane.b32.xlu0 %v1248_v44, 507 }
0x178b   :  { %v1187_v57 = vpop.permute.xlu0 %1186  ;;  %v1191_v58 = vpop.permute.xlu1 %1190 }
0x178c   :  { %v1194_v25 = vadd.f32 %v1187_v57, %v3311_v51  ;;  %v1195_v17 = vadd.f32 %v1191_v58, %v3313_v52 }
0x178e   :  { %v3317_v24 = vadd.f32 %v1204_v53, %v1194_v25  ;;  %v3319_v37 = vadd.f32 %v1208_v38, %v1195_v17  ;;  %v3323_v59 = vadd.f32 %v1220_v55, %v1195_v17  ;;  %v3325_v60 = vadd.f32 %v1216_v54, %v1194_v25 }
0x178f   :  { %v1240_v61 = vpop.permute.xlu0 %1239  ;;  %v1244_v62 = vpop.permute.xlu1 %1243  ;;  %v3329_v49 = vadd.f32 %v1232_v56, %v1195_v17  ;;  %v3331_v63 = vadd.f32 %v1228_v9, %v1194_v25 }
0x1790   :  { %1288 = vperm.xlu0 %2823, %v3317_v24   ;;  %1291 = vperm.xlu1 %2824, %v3319_v37   ;;  %v3335_v1 = vadd.f32 %v1240_v61, %v1194_v25  ;;  %v3337_v6 = vadd.f32 %v1244_v62, %v1195_v17 }
0x1793   :  { %v1252_v7 = vpop.permute.xlu0 %1251  ;;  %v1256_v10 = vpop.permute.xlu1 %1255 }
0x1794   :  { %1297 = vperm.xlu0 %2823, %v3323_v59   ;;  %1294 = vperm.xlu1 %2824, %v3325_v60   ;;  %v3341_v12 = vadd.f32 %v1252_v7, %v1194_v25  ;;  %v3343_v13 = vadd.f32 %v1256_v10, %v1195_v17 }
0x1798   :  { %1303 = vperm.xlu0 %2823, %v3329_v49   ;;  %1300 = vperm.xlu1 %2824, %v3331_v63  }
0x179c   :  { %1306 = vperm.xlu1 %2824, %v3335_v1   ;;  %1309 = vperm.xlu0 %2823, %v3337_v6  }
0x17a0   :  { %1312 = vperm.xlu1 %2824, %v3341_v12   ;;  %1315 = vperm.xlu0 %2823, %v3343_v13  }
0x17a4   :  { %1530 = vbcast.lane.b32.xlu0 %v1528_v21, 256 }
0x17a8   :  { %1535 = vbcast.lane.b32.xlu0 %v3264_v19, 256 }
0x17ac   :  { %1538 = vbcast.lane.b32.xlu0 %v3271_v40, 256 }
0x17b0   :  { %1541 = vbcast.lane.b32.xlu0 %v3288_v11, 256 }
0x17b4   :  { %1544 = vbcast.lane.b32.xlu0 %v1236_v50, 256 }
0x17b8   :  { %1547 = vbcast.lane.b32.xlu0 %v1248_v44, 256 }
0x180f   :  { %v1289_v2 = vpop.permute.xlu0 %1288  ;;  %v1292_v5 = vpop.permute.xlu1 %1291 }
0x1810   :  { %v1320_v19 = vrot.slane %v1289_v2, %v3355_v26  ;;  %v1325_v40 = vrot.slane %v1292_v5, %v3358_v27  ;;  %v3398_v5 = vsub.s32 2, %v3028_v16 }
0x1812   :  { %v1327_v42 = vsel %vm1326_vm0, %v1325_v40, %v1320_v19  ;;  %v1704_v22 = vrot.slane %v3300_v43, %v3398_v5 }
0x1813   :  { %v1298_v0 = vpop.permute.xlu0 %1297  ;;  %v1295_v23 = vpop.permute.xlu1 %1294 }
0x1814   :  { %v1335_v28 = vrot.slane %v1298_v0, %v3358_v27  ;;  %v1331_v29 = vrot.slane %v1295_v23, %v3355_v26 }
0x1816   :  { %v1336_v36 = vsel %vm1326_vm0, %v1335_v28, %v1331_v29 }
0x1817   :  { %v1304_v3 = vpop.permute.xlu0 %1303  ;;  %v1301_v46 = vpop.permute.xlu1 %1300  ;;  %v1365_v38 = vsel %vm1364_vm1, %v1336_v36, %v1327_v42 }
0x1818   :  { %v1344_v30 = vrot.slane %v1304_v3, %v3358_v27  ;;  %v1340_v14 = vrot.slane %v1301_v46, %v3355_v26 }
0x181a   :  { %v1345_v39 = vsel %vm1326_vm0, %v1344_v30, %v1340_v14 }
0x181b   :  { %v1310_v8 = vpop.permute.xlu0 %1309  ;;  %v1307_v32 = vpop.permute.xlu1 %1306  ;;  %v1367_v54 = vsel %vm1366_vm2, %v1345_v39, %v1365_v38 }
0x181c   :  { %v1353_v33 = vrot.slane %v1310_v8, %v3358_v27  ;;  %v1349_v11 = vrot.slane %v1307_v32, %v3355_v26 }
0x181e   :  { %v1354_v50 = vsel %vm1326_vm0, %v1353_v33, %v1349_v11 }
0x181f   :  { %v1316_v47 = vpop.permute.xlu0 %1315  ;;  %v1313_v48 = vpop.permute.xlu1 %1312  ;;  %v1369_v9 = vsel %vm1368_vm3, %v1354_v50, %v1367_v54 }
0x1820   :  { %v1362_v44 = vrot.slane %v1316_v47, %v3358_v27  ;;  %v1358_v53 = vrot.slane %v1313_v48, %v3355_v26 }
0x1822   :  { %v1363_v55 = vsel %vm1326_vm0, %v1362_v44, %v1358_v53 }
0x1823   :  { %v1371_v56 = vsel %vm1370_vm4, %v1363_v55, %v1369_v9  ;;  %v1531_v58 = vpop.permute.xlu0 %1530 }
0x1824   :  { %v1374_v57 = vsel %vm1373_vm11, %v1371_v56, -inf }
0x1825   :  { %1375 = vmax.xlane.f32.xlu1 %v1374_v57  ;;  %v3451_v57 = vsub.s32 3, %v3028_v16 }
0x1827   :  { %v3380_v25 = vpop.permute.xlu0 %1535 }
0x182b   :  { %v3382_v17 = vpop.permute.xlu0 %1538 }
0x182f   :  { %v3384_v61 = vpop.permute.xlu0 %1541 }
0x1833   :  { %v3389_v10 = vpop.permute.xlu0 %1544 }
0x1837   :  { %v3411_v3 = vpop.permute.xlu0 %1547 }
0x18b2   :  { %v3386_v62 = vpop.xlane.xlu1 %1375 }
0x18b3   :  { %v1533_v7 = vadd.f32 %v1531_v58, %v3386_v62  ;;  %v1856_v58 = vrot.slane %v3300_v43, %v3451_v57 }
0x18b5   :  { %v3392_v21 = vadd.f32 %v3389_v10, %v1533_v7  ;;  %v3395_v2 = vadd.f32 %v3380_v25, %v1533_v7  ;;  %v3405_v0 = vadd.f32 %v3382_v17, %v1533_v7  ;;  %v3409_v23 = vadd.f32 %v3384_v61, %v1533_v7 }
0x18b6   :  { %v3415_v46 = vadd.f32 %v3411_v3, %v1533_v7 }
0x18b7   :  { %1574 = vperm.xlu1 %2824, %v3392_v21   ;;  %1565 = vperm.xlu0 %2823, %v3395_v2  }
0x18bb   :  { %1706 = vbcast.lane.b32.xlu1 %v1704_v22, 256  ;;  %1568 = vperm.xlu0 %2823, %v3405_v0  }
0x18bf   :  { %1571 = vperm.xlu0 %2823, %v3409_v23  }
0x18c3   :  { %1577 = vperm.xlu0 %2823, %v3415_v46  }
0x1936   :  { %v1566_v28 = vpop.permute.xlu0 %1565  ;;  %v1575_v40 = vpop.permute.xlu1 %1574 }
0x1937   :  { %v1582_v14 = vrot.slane %v1566_v28, %v3355_v26  ;;  %v1594_v11 = vrot.slane %v1575_v40, %v3355_v26 }
0x193a   :  { %v1569_v29 = vpop.permute.xlu0 %1568  ;;  %v1707_v50 = vpop.permute.xlu1 %1706 }
0x193b   :  { %v1586_v30 = vrot.slane %v1569_v29, %v3355_v26 }
0x193d   :  { %v1599_v32 = vsel %vm1364_vm1, %v1586_v30, %v1582_v14 }
0x193e   :  { %v1572_v19 = vpop.permute.xlu0 %1571 }
0x193f   :  { %v1590_v8 = vrot.slane %v1572_v19, %v3355_v26 }
0x1941   :  { %v1600_v33 = vsel %vm1366_vm2, %v1590_v8, %v1599_v32 }
0x1942   :  { %v1578_v36 = vpop.permute.xlu0 %1577  ;;  %v1601_v42 = vsel %vm1368_vm3, %v1594_v11, %v1600_v33 }
0x1943   :  { %v1598_v39 = vrot.slane %v1578_v36, %v3355_v26 }
0x1945   :  { %v1602_v47 = vsel %vm1370_vm4, %v1598_v39, %v1601_v42 }
0x1946   :  { %v1605_v48 = vsel %vm4045_vm15, %v1602_v47, -inf }
0x1947   :  { %1606 = vmax.xlane.f32.xlu0 %v1605_v48 }
0x19d4   :  { %v3428_v44 = vpop.xlane.xlu0 %1606 }
0x19d5   :  { %v1709_v53 = vadd.f32 %v1707_v50, %v3428_v44 }
0x19d7   :  { %v3432_v38 = vadd.f32 %v1709_v53, %v3380_v25  ;;  %v3436_v54 = vadd.f32 %v1709_v53, %v3382_v17  ;;  %v3440_v55 = vadd.f32 %v1709_v53, %v3384_v61  ;;  %v3444_v9 = vadd.f32 %v1709_v53, %v3389_v10 }
0x19d8   :  { %v3448_v56 = vadd.f32 %v1709_v53, %v3411_v3 }
0x19d9   :  { %1721 = vperm.xlu1 %2824, %v3432_v38   ;;  %4046 = vst [vmem:[#allocation9_spill] sm:$0xff] %v3436_v54  ;;  %4047 = vst [vmem:[#allocation10_spill] sm:$0xff] %v3444_v9 }
0x19da   :  { %4048 = vst [vmem:[#allocation11_spill] sm:$0xff] %v3448_v56 }
0x19dd   :  { %1724 = vperm.xlu1 %2824, %v3436_v54  }
0x19e1   :  { %1727 = vperm.xlu1 %2824, %v3440_v55  }
0x19e5   :  { %1730 = vperm.xlu1 %2824, %v3444_v9  }
0x19e9   :  { %1733 = vperm.xlu1 %2824, %v3448_v56  }
0x19ed   :  { %1858 = vbcast.lane.b32.xlu1 %v1856_v58, 256 }
0x1a58   :  { %v1722_v7 = vpop.permute.xlu1 %1721 }
0x1a59   :  { %v1738_v19 = vrot.slane %v1722_v7, %v3355_v26 }
0x1a5c   :  { %v1725_v22 = vpop.permute.xlu1 %1724 }
0x1a5d   :  { %v1742_v29 = vrot.slane %v1725_v22, %v3355_v26  ;;  %v2008_v22 = vrot.slane %v3300_v43, %v3293_v35 }
0x1a5f   :  { %v1755_v8 = vsel %vm1364_vm1, %v1742_v29, %v1738_v19 }
0x1a60   :  { %v1728_v28 = vpop.permute.xlu1 %1727 }
0x1a61   :  { %v1746_v14 = vrot.slane %v1728_v28, %v3355_v26 }
0x1a63   :  { %v1756_v33 = vsel %vm1366_vm2, %v1746_v14, %v1755_v8 }
0x1a64   :  { %v1731_v30 = vpop.permute.xlu1 %1730 }
0x1a65   :  { %v1750_v40 = vrot.slane %v1731_v30, %v3355_v26 }
0x1a67   :  { %v1757_v36 = vsel %vm1368_vm3, %v1750_v40, %v1756_v33 }
0x1a68   :  { %v1734_v32 = vpop.permute.xlu1 %1733 }
0x1a69   :  { %v1754_v11 = vrot.slane %v1734_v32, %v3355_v26 }
0x1a6b   :  { %v1758_v39 = vsel %vm1370_vm4, %v1754_v11, %v1757_v36 }
0x1a6c   :  { %v1760_v42 = vsel %vm4045_vm15, %v1758_v39, -inf  ;;  %v1859_v47 = vpop.permute.xlu1 %1858 }
0x1a6d   :  { %1761 = vmax.xlane.f32.xlu0 %v1760_v42 }
0x1afa   :  { %v3466_v48 = vpop.xlane.xlu0 %1761 }
0x1afb   :  { %v1861_v50 = vadd.f32 %v1859_v47, %v3466_v48 }
0x1afd   :  { %v3470_v53 = vadd.f32 %v1861_v50, %v3382_v17  ;;  %v3473_v58 = vadd.f32 %v1861_v50, %v3380_v25  ;;  %v3478_v7 = vadd.f32 %v1861_v50, %v3384_v61  ;;  %v3484_v28 = vadd.f32 %v1861_v50, %v3389_v10 }
0x1afe   :  { %v3488_v29 = vadd.f32 %v1861_v50, %v3411_v3 }
0x1aff   :  { %4049 = vst [vmem:[#allocation12_spill] sm:$0xff] %v3470_v53  ;;  %4050 = vst [vmem:[#allocation13_spill] sm:$0xff] %v3473_v58  ;;  %1876 = vperm.xlu1 %2824, %v3470_v53   ;;  %1873 = vperm.xlu0 %2823, %v3473_v58  }
0x1b03   :  { %1879 = vperm.xlu1 %2824, %v3478_v7   ;;  %2010 = vbcast.lane.b32.xlu0 %v2008_v22, 256 }
0x1b07   :  { %1882 = vperm.xlu1 %2824, %v3484_v28  }
0x1b0b   :  { %1885 = vperm.xlu1 %2824, %v3488_v29  }
0x1b7e   :  { %v1877_v30 = vpop.permute.xlu1 %1876  ;;  %v1874_v19 = vpop.permute.xlu0 %1873 }
0x1b7f   :  { %v1894_v40 = vrot.slane %v1877_v30, %v3355_v26  ;;  %v1890_v8 = vrot.slane %v1874_v19, %v3355_v26 }
0x1b81   :  { %v1907_v36 = vsel %vm1364_vm1, %v1894_v40, %v1890_v8 }
0x1b82   :  { %v1880_v14 = vpop.permute.xlu1 %1879  ;;  %v2011_v19 = vpop.permute.xlu0 %2010 }
0x1b83   :  { %v1898_v33 = vrot.slane %v1880_v14, %v3355_v26  ;;  %v2160_v14 = vrot.slane %v3300_v43, %v1199_v4 }
0x1b85   :  { %v1908_v42 = vsel %vm1366_vm2, %v1898_v33, %v1907_v36 }
0x1b86   :  { %v1883_v32 = vpop.permute.xlu1 %1882 }
0x1b87   :  { %v1902_v11 = vrot.slane %v1883_v32, %v3355_v26 }
0x1b89   :  { %v1909_v50 = vsel %vm1368_vm3, %v1902_v11, %v1908_v42 }
0x1b8a   :  { %v1886_v39 = vpop.permute.xlu1 %1885 }
0x1b8b   :  { %v1906_v47 = vrot.slane %v1886_v39, %v3355_v26 }
0x1b8d   :  { %v1910_v22 = vsel %vm1370_vm4, %v1906_v47, %v1909_v50 }
0x1b8e   :  { %v1912_v30 = vsel %vm4045_vm15, %v1910_v22, -inf }
0x1b8f   :  { %1913 = vmax.xlane.f32.xlu1 %v1912_v30 }
0x1ba0   :  { %2162 = vbcast.lane.b32.xlu1 %v2160_v14, 256 }
0x1c1c   :  { %v3504_v32 = vpop.xlane.xlu1 %1913 }
0x1c1d   :  { %v2013_v40 = vadd.f32 %v2011_v19, %v3504_v32 }
0x1c1f   :  { %v3508_v8 = vadd.f32 %v2013_v40, %v3380_v25  ;;  %v3512_v33 = vadd.f32 %v2013_v40, %v3382_v17  ;;  %v3516_v11 = vadd.f32 %v2013_v40, %v3384_v61  ;;  %v3520_v4 = vadd.f32 %v2013_v40, %v3389_v10 }
0x1c20   :  { %v3524_v36 = vadd.f32 %v2013_v40, %v3411_v3 }
0x1c21   :  { %4051 = vst [vmem:[#allocation14_spill] sm:$0xff] %v3508_v8  ;;  %2025 = vperm.xlu0 %2823, %v3508_v8   ;;  %4052 = vst [vmem:[#allocation15_spill] sm:$0xff] %v3512_v33 }
0x1c22   :  { %4053 = vst [vmem:[#allocation16_spill] sm:$0xff] %v3516_v11  ;;  %4054 = vst [vmem:[#allocation17_spill] sm:$0xff] %v3520_v4 }
0x1c23   :  { %4055 = vst [vmem:[#allocation18_spill] sm:$0xff] %v3524_v36 }
0x1c25   :  { %2028 = vperm.xlu0 %2823, %v3512_v33  }
0x1c29   :  { %2031 = vperm.xlu0 %2823, %v3516_v11  }
0x1c2d   :  { %2034 = vperm.xlu0 %2823, %v3520_v4   ;;  %v2163_v4 = vpop.permute.xlu1 %2162 }
0x1c31   :  { %2037 = vperm.xlu0 %2823, %v3524_v36  }
0x1ca0   :  { %v2026_v39 = vpop.permute.xlu0 %2025 }
0x1ca1   :  { %v2042_v14 = vrot.slane %v2026_v39, %v3355_v26 }
0x1ca4   :  { %v2029_v42 = vpop.permute.xlu0 %2028 }
0x1ca5   :  { %v2046_v50 = vrot.slane %v2029_v42, %v3355_v26 }
0x1ca7   :  { %v2059_v34 = vsel %vm1364_vm1, %v2046_v50, %v2042_v14 }
0x1ca8   :  { %v2032_v47 = vpop.permute.xlu0 %2031 }
0x1ca9   :  { %v2050_v30 = vrot.slane %v2032_v47, %v3355_v26 }
0x1cab   :  { %v2060_v40 = vsel %vm1366_vm2, %v2050_v30, %v2059_v34 }
0x1cac   :  { %v2035_v22 = vpop.permute.xlu0 %2034 }
0x1cad   :  { %v2054_v19 = vrot.slane %v2035_v22, %v3355_v26 }
0x1caf   :  { %v2061_v54 = vsel %vm1368_vm3, %v2054_v19, %v2060_v40 }
0x1cb0   :  { %v2038_v45 = vpop.permute.xlu0 %2037 }
0x1cb1   :  { %v2058_v33 = vrot.slane %v2038_v45, %v3355_v26 }
0x1cb3   :  { %v2062_v36 = vsel %vm1370_vm4, %v2058_v33, %v2061_v54  ;;  %v1147_v33 = vsel %vm1145_vm13, %v3026_v15, 5 }
0x1cb4   :  { %v2064_v42 = vsel %vm4045_vm15, %v2062_v36, -inf  ;;  %v1148_v36 = vsel %vm1146_vm10, %v3026_v15, 5 }
0x1cb5   :  { %2065 = vmax.xlane.f32.xlu0 %v2064_v42  ;;  %v1164_v14 = vsel %vm1141_vm14, %v1148_v36, 2147483647  ;;  %vm2480_vm14 = vcmask 89112  }
0x1cb6   :  { %v1166_v40 = vshra.s32 %v1164_v14, 16 }
0x1cb8   :  { %v1168_v42 = vcvt.s32.f32 %v1166_v40 }
0x1d42   :  { %v3537_v47 = vpop.xlane.xlu0 %2065 }
0x1d43   :  { %4056 = vst [vmem:[#allocation19_spill] sm:$0xff] %v3537_v47  ;;  %v2165_v39 = vadd.f32 %v2163_v4, %v3537_v47  ;;  %v1149_v4 = vsel %vm1137_vm12, %v1147_v33, 2147483647  ;;  %v1165_v47 = vand.u32 65535, %v1164_v14 }
0x1d44   :  { %v1151_v30 = vshra.s32 %v1149_v4, 16  ;;  %v1150_v11 = vand.u32 65535, %v1149_v4 }
0x1d45   :  { %v3541_v22 = vadd.f32 %v2165_v39, %v3384_v61  ;;  %v3544_v50 = vadd.f32 %v2165_v39, %v3380_v25  ;;  %v3549_v45 = vadd.f32 %v2165_v39, %v3382_v17  ;;  %v3553_v34 = vadd.f32 %v2165_v39, %v3389_v10 }
0x1d46   :  { %v3557_v54 = vadd.f32 %v2165_v39, %v3411_v3  ;;  %v1153_v19 = vcvt.s32.f32 %v1151_v30  ;;  %v1152_v8 = vcvt.s32.f32 %v1150_v11  ;;  %v1167_v58 = vcvt.s32.f32 %v1165_v47 }
0x1d47   :  { %2183 = vperm.xlu0 %2823, %v3541_v22   ;;  %2177 = vperm.xlu1 %2824, %v3544_v50   ;;  %4057 = vst [vmem:[#allocation20_spill] sm:$0xff] %v3549_v45 }
0x1d4b   :  { %2180 = vperm.xlu1 %2824, %v3549_v45  }
0x1d4f   :  { %2186 = vperm.xlu1 %2824, %v3553_v34  }
0x1d53   :  { %2189 = vperm.xlu1 %2824, %v3557_v54  }
0x1d77   :  { %1154 = vmin.xlane.f32.xlu1 %v1153_v19 }
0x1d7b   :  { %1169 = vmin.xlane.f32.xlu1 %v1168_v42 }
0x1dc6   :  { %v2178_v39 = vpop.permute.xlu1 %2177  ;;  %v2184_v31 = vpop.permute.xlu0 %2183 }
0x1dc7   :  { %v2194_v52 = vrot.slane %v2178_v39, %v3355_v26  ;;  %v2202_v9 = vrot.slane %v2184_v31, %v3355_v26  ;;  %v2475_v31 = vadd.s32 4294967293, %v3026_v15 }
0x1dca   :  { %v2181_v45 = vpop.permute.xlu1 %2180 }
0x1dcb   :  { %v2198_v56 = vrot.slane %v2181_v45, %v3355_v26 }
0x1dcd   :  { %v2211_v36 = vsel %vm1364_vm1, %v2198_v56, %v2194_v52 }
0x1dce   :  { %v2187_v20 = vpop.permute.xlu1 %2186  ;;  %v2212_v45 = vsel %vm1366_vm2, %v2202_v9, %v2211_v36  ;;  %v2470_v9 = vadd.s32 5, %v3026_v15 }
0x1dcf   :  { %v2206_v30 = vrot.slane %v2187_v20, %v3355_v26 }
0x1dd0   :  { %v2473_v36 = vsub.s32 %v2470_v9, %v3028_v16 }
0x1dd1   :  { %v2213_v11 = vsel %vm1368_vm3, %v2206_v30, %v2212_v45 }
0x1dd2   :  { %v2190_v51 = vpop.permute.xlu1 %2189 }
0x1dd3   :  { %v2210_v53 = vrot.slane %v2190_v51, %v3355_v26 }
0x1dd5   :  { %v2214_v14 = vsel %vm1370_vm4, %v2210_v53, %v2213_v11 }
0x1dd6   :  { %v2216_v56 = vsel %vm4045_vm15, %v2214_v14, -inf }
0x1e04   :  { %v1155_v33 = vpop.xlane.xlu1 %1154 }
0x1e05   :  { %vm1156_vm10 = vcmp.eq.f32.partialorder %v1153_v19, %v1155_v33  ;;  %v1161_v47 = vcvt.f32.s32 %v1155_v33  ;;  %v1385_v33 = vrot.slane %v3386_v62, %v3308_v18 }
0x1e06   :  { %v1157_v40 = vsel %vm1156_vm10, %v1152_v8, inf  ;;  %v4058_v8 = vsub.s32 6, %v3028_v16 }
0x1e07   :  { %1158 = vmin.xlane.f32.xlu0 %v1157_v40  ;;  %v1162_v53 = vshll.u32 %v1161_v47, 16 }
0x1e08   :  { %v1170_v4 = vpop.xlane.xlu1 %1169  ;;  %v2312_v19 = vrot.slane %v3300_v43, %v4058_v8  ;;  %v1389_v8 = vrot.slane %v3386_v62, %v3398_v5 }
0x1e09   :  { %vm1171_vm12 = vcmp.eq.f32.partialorder %v1168_v42, %v1170_v4  ;;  %v1381_v42 = vrot.slane %v3386_v62, %v3298_v41  ;;  %v1176_v20 = vcvt.f32.s32 %v1170_v4 }
0x1e0a   :  { %v1172_v39 = vsel %vm1171_vm12, %v1167_v58, inf  ;;  %vm1405_vm12 = vcmp.eq.f32.partialorder %v3325_v60, %v1385_v33  ;;  %vm1407_vm9 = vcmp.eq.f32.partialorder %v3331_v63, %v1389_v8 }
0x1e0b   :  { %1173 = vmin.xlane.f32.xlu1 %v1172_v39  ;;  %vm1403_vm13 = vcmp.eq.f32.partialorder %v3317_v24, %v1381_v42  ;;  %v1177_v45 = vshll.u32 %v1176_v20, 16  ;;  %v2478_v39 = vsub.s32 %v2475_v31, %v3028_v16  ;;  %vm1404_vm10 = vcmp.eq.f32.partialorder %v3319_v37, %v1381_v42 }
0x1e0c   :  { %v1393_v37 = vrot.slane %v3386_v62, %v3451_v57  ;;  %v1397_v20 = vrot.slane %v3386_v62, %v3293_v35 }
0x1e0f   :  { %2217 = vmax.xlane.f32.xlu1 %v2216_v56 }
0x1e1d   :  { %1415 = vbcast.lane.b32.xlu0 %v3026_v15, 507 }
0x1e20   :  { %2314 = vbcast.lane.b32.xlu1 %v2312_v19, 256 }
0x1e21   :  { %1419 = vbcast.lane.b32.xlu0 %v3026_v15, 259 }
0x1e94   :  { %v1159_v58 = vpop.xlane.xlu0 %1158 }
0x1e95   :  { %v1160_v51 = vcvt.f32.s32 %v1159_v58 }
0x1e97   :  { %v1163_v52 = vadd.s32 %v1162_v53, %v1160_v51 }
0x1e98   :  { %v1416_v30 = vpop.permute.xlu0 %1415  ;;  %v1174_v40 = vpop.xlane.xlu1 %1173 }
0x1e99   :  { %v1175_v11 = vcvt.f32.s32 %v1174_v40  ;;  %v1421_v14 = vsel %vm1403_vm13, %v1416_v30, 5  ;;  %v2474_v24 = vrot.slane %v1163_v52, %v2473_v36  ;;  %v1423_v9 = vsel %vm1405_vm12, %v1416_v30, 5 }
0x1e9a   :  { %1432 = vperm.xlu1 %2824, %v1421_v14   ;;  %vm1406_vm13 = vcmp.eq.f32.partialorder %v3323_v59, %v1385_v33  ;;  %v1425_v60 = vsel %vm1407_vm9, %v1416_v30, 5  ;;  %vm1409_vm12 = vcmp.eq.f32.partialorder %v3335_v1, %v1393_v37  ;;  %vm1412_vm9 = vcmp.eq.f32.partialorder %v3343_v13, %v1397_v20 }
0x1e9b   :  { %v1178_v4 = vadd.s32 %v1177_v45, %v1175_v11  ;;  %v1427_v59 = vsel %vm1409_vm12, %v1416_v30, 5 }
0x1e9c   :  { %v1420_v56 = vpop.permute.xlu0 %1419  ;;  %v3602_v53 = vpop.xlane.xlu1 %2217 }
0x1e9d   :  { %v2479_v19 = vrot.slane %v1178_v4, %v2478_v39  ;;  %v1422_v47 = vsel %vm1404_vm10, %v1420_v56, 5  ;;  %v1424_v42 = vsel %vm1406_vm13, %v1420_v56, 5  ;;  %vm1408_vm10 = vcmp.eq.f32.partialorder %v3329_v49, %v1389_v8 }
0x1e9e   :  { %1435 = vperm.xlu0 %2823, %v1422_v47   ;;  %1438 = vperm.xlu1 %2824, %v1423_v9   ;;  %v1426_v51 = vsel %vm1408_vm10, %v1420_v56, 5  ;;  %vm1411_vm13 = vcmp.eq.f32.partialorder %v3341_v12, %v1397_v20  ;;  %v1430_v1 = vsel %vm1412_vm9, %v1420_v56, 5 }
0x1e9f   :  { %v3596_v58 = vsel %vm2480_vm14, %v2479_v19, %v2474_v24  ;;  %vm1410_vm14 = vcmp.eq.f32.partialorder %v3337_v6, %v1393_v37  ;;  %v1429_v52 = vsel %vm1411_vm13, %v1416_v30, 5 }
0x1ea0   :  { %v2315_v63 = vpop.permute.xlu1 %2314  ;;  %v1428_v31 = vsel %vm1410_vm14, %v1420_v56, 5 }
0x1ea1   :  { %v2317_v49 = vadd.f32 %v2315_v63, %v3602_v53 }
0x1ea2   :  { %1441 = vperm.xlu0 %2823, %v1424_v42   ;;  %1444 = vperm.xlu1 %2824, %v1425_v60  }
0x1ea3   :  { %v3613_v62 = vadd.f32 %v2317_v49, %v3380_v25  ;;  %v3617_v6 = vadd.f32 %v2317_v49, %v3382_v17  ;;  %v3621_v12 = vadd.f32 %v2317_v49, %v3384_v61  ;;  %v3625_v36 = vadd.f32 %v2317_v49, %v3389_v10 }
0x1ea4   :  { %v3629_v13 = vadd.f32 %v2317_v49, %v3411_v3 }
0x1ea6   :  { %1447 = vperm.xlu0 %2823, %v1426_v51   ;;  %1450 = vperm.xlu1 %2824, %v1427_v59  }
0x1eaa   :  { %1453 = vperm.xlu0 %2823, %v1428_v31   ;;  %1456 = vperm.xlu1 %2824, %v1429_v52  }
0x1eae   :  { %1459 = vperm.xlu0 %2823, %v1430_v1  }
0x1eb2   :  { %2329 = vperm.xlu0 %2823, %v3613_v62  }
0x1eb6   :  { %2332 = vperm.xlu0 %2823, %v3617_v6  }
0x1eba   :  { %2335 = vperm.xlu0 %2823, %v3621_v12  }
0x1ebe   :  { %2338 = vperm.xlu0 %2823, %v3625_v36  }
0x1ec2   :  { %2341 = vperm.xlu0 %2823, %v3629_v13  }
0x1f19   :  { %v1433_v25 = vpop.permute.xlu1 %1432 }
0x1f1a   :  { %v1464_v24 = vrot.slane %v1433_v25, %v3355_v26 }
0x1f1d   :  { %v1436_v17 = vpop.permute.xlu0 %1435  ;;  %v1439_v30 = vpop.permute.xlu1 %1438 }
0x1f1e   :  { %v1468_v10 = vrot.slane %v1436_v17, %v3358_v27  ;;  %v1473_v14 = vrot.slane %v1439_v30, %v3355_v26 }
0x1f20   :  { %v1469_v42 = vsel %vm1326_vm0, %v1468_v10, %v1464_v24 }
0x1f21   :  { %v1442_v40 = vpop.permute.xlu0 %1441  ;;  %v1445_v33 = vpop.permute.xlu1 %1444 }
0x1f22   :  { %v1477_v39 = vrot.slane %v1442_v40, %v3358_v27  ;;  %v1482_v56 = vrot.slane %v1445_v33, %v3355_v26 }
0x1f24   :  { %v1478_v19 = vsel %vm1326_vm0, %v1477_v39, %v1473_v14 }
0x1f25   :  { %v1448_v45 = vpop.permute.xlu0 %1447  ;;  %v1451_v61 = vpop.permute.xlu1 %1450  ;;  %v1506_v51 = vsel %vm1364_vm1, %v1478_v19, %v1469_v42 }
0x1f26   :  { %v1486_v11 = vrot.slane %v1448_v45, %v3358_v27  ;;  %v1491_v47 = vrot.slane %v1451_v61, %v3355_v26 }
0x1f28   :  { %v1487_v37 = vsel %vm1326_vm0, %v1486_v11, %v1482_v56 }
0x1f29   :  { %v1454_v4 = vpop.permute.xlu0 %1453  ;;  %v1457_v9 = vpop.permute.xlu1 %1456  ;;  %v1507_v31 = vsel %vm1366_vm2, %v1487_v37, %v1506_v51  ;;  %v2223_v51 = vrot.slane %v3602_v53, %v3298_v41 }
0x1f2a   :  { %v1495_v8 = vrot.slane %v1454_v4, %v3358_v27  ;;  %v1500_v59 = vrot.slane %v1457_v9, %v3355_v26 }
0x1f2b   :  { %vm3693_vm12 = vcmp.eq.f32.partialorder %v3544_v50, %v2223_v51  ;;  %v1783_v51 = vrot.slane %v3466_v48, %v3293_v35 }
0x1f2c   :  { %v1496_v60 = vsel %vm1326_vm0, %v1495_v8, %v1491_v47 }
0x1f2d   :  { %v1460_v20 = vpop.permute.xlu0 %1459  ;;  %v1508_v52 = vsel %vm1368_vm3, %v1496_v60, %v1507_v31  ;;  %v1927_v60 = vrot.slane %v3504_v32, %v3398_v5  ;;  %v2235_v31 = vrot.slane %v3602_v53, %v3451_v57 }
0x1f2e   :  { %v1504_v63 = vrot.slane %v1460_v20, %v3358_v27  ;;  %v1931_v20 = vrot.slane %v3504_v32, %v3451_v57 }
0x1f2f   :  { %vm3714_vm9 = vcmp.eq.f32.partialorder %v3553_v34, %v2235_v31 }
0x1f30   :  { %v1505_v49 = vsel %vm1326_vm0, %v1504_v63, %v1500_v59  ;;  %v1935_v59 = vrot.slane %v3504_v32, %v3293_v35  ;;  %v2231_v63 = vrot.slane %v3602_v53, %v3398_v5  ;;  %vm3688_vm10 = vcmp.eq.f32.partialorder %v3484_v28, %v1931_v20 }
0x1f31   :  { %v1509_v1 = vsel %vm1370_vm4, %v1505_v49, %v1508_v52  ;;  %v2330_v40 = vpop.permute.xlu0 %2329  ;;  %v2239_v52 = vrot.slane %v3602_v53, %v3293_v35 }
0x1f32   :  { %v1510_v25 = vsel %vm1373_vm11, %v1509_v1, 2147483647  ;;  %v2346_v10 = vrot.slane %v2330_v40, %v3355_v26  ;;  %vm3683_vm11 = vcmp.eq.f32.partialorder %v3478_v7, %v1927_v60  ;;  %vm3698_vm14 = vcmp.eq.f32.partialorder %v3488_v29, %v1935_v59 }
0x1f33   :  { %v1512_v17 = vshra.s32 %v1510_v25, 16  ;;  %v1511_v47 = vand.u32 65535, %v1510_v25  ;;  %vm3703_vm13 = vcmp.eq.f32.partialorder %v3541_v22, %v2231_v63  ;;  %v4078_v63 = vld [vmem:[#allocation11_spill] sm:$0xff] }
0x1f35   :  { %v1514_v30 = vcvt.s32.f32 %v1512_v17  ;;  %v2333_v33 = vpop.permute.xlu0 %2332  ;;  %v1513_v37 = vcvt.s32.f32 %v1511_v47  ;;  %v1779_v47 = vrot.slane %v3466_v48, %v3451_v57 }
0x1f36   :  { %v2350_v27 = vrot.slane %v2333_v33, %v3355_v26 }
0x1f37   :  { %1515 = vmin.xlane.f32.xlu1 %v1514_v30 }
0x1f38   :  { %v2363_v56 = vsel %vm1364_vm1, %v2350_v27, %v2346_v10  ;;  %v1616_v27 = vrot.slane %v3428_v44, %v3308_v18 }
0x1f39   :  { %v2336_v45 = vpop.permute.xlu0 %2335 }
0x1f3a   :  { %v2354_v11 = vrot.slane %v2336_v45, %v3355_v26  ;;  %vm1635_vm7 = vcmp.eq.f32.partialorder %v3405_v0, %v1616_v27  ;;  %v2227_v27 = vrot.slane %v3602_v53, %v3308_v18 }
0x1f3c   :  { %v2364_v8 = vsel %vm1366_vm2, %v2354_v11, %v2363_v56  ;;  %v1620_v11 = vrot.slane %v3428_v44, %v3398_v5  ;;  %v1767_v56 = vrot.slane %v3466_v48, %v3298_v41 }
0x1f3d   :  { %v2339_v61 = vpop.permute.xlu0 %2338 }
0x1f3e   :  { %v2358_v14 = vrot.slane %v2339_v61, %v3355_v26  ;;  %v1612_v61 = vrot.slane %v3428_v44, %v3298_v41  ;;  %vm1636_vm6 = vcmp.eq.f32.partialorder %v3409_v23, %v1620_v11  ;;  %v4080_v11 = vld [vmem:[#allocation20_spill] sm:$0xff] }
0x1f40   :  { %vm1634_vm8 = vcmp.eq.f32.partialorder %v3395_v2, %v1612_v61  ;;  %v4079_v61 = vld [vmem:[#allocation16_spill] sm:$0xff] }
0x1f41   :  { %v2342_v39 = vpop.permute.xlu0 %2341 }
0x1f42   :  { %v2362_v4 = vrot.slane %v2342_v39, %v3355_v26 }
0x1f48   :  { %1640 = vbcast.lane.b32.xlu1 %v3026_v15, 256  ;;  %v2365_v15 = vsel %vm1368_vm3, %v2358_v14, %v2364_v8  ;;  %v1624_v14 = vrot.slane %v3428_v44, %v3451_v57  ;;  %v1775_v8 = vrot.slane %v3466_v48, %v3398_v5 }
0x1f49   :  { %v2366_v24 = vsel %vm1370_vm4, %v2362_v4, %v2365_v15  ;;  %v1628_v4 = vrot.slane %v3428_v44, %v3293_v35  ;;  %v1919_v44 = vrot.slane %v3504_v32, %v3298_v41  ;;  %v4073_v15 = vld [vmem:[#allocation13_spill] sm:$0xff] }
0x1f4a   :  { %v2368_v19 = vsel %vm4045_vm15, %v2366_v24, -inf  ;;  %vm1637_vm15 = vcmp.eq.f32.partialorder %v3392_v21, %v1624_v14  ;;  %v1923_v24 = vrot.slane %v3504_v32, %v3308_v18  ;;  %v4077_v32 = vld [vmem:[#allocation14_spill] sm:$0xff] }
0x1f6c   :  { %2369 = vmax.xlane.f32.xlu1 %v2368_v19  ;;  %v4074_v19 = vld [vmem:[#allocation12_spill] sm:$0xff] }
0x1fc4   :  { %v3663_v9 = vpop.xlane.xlu1 %1515 }
0x1fc5   :  { %vm1517_vm0 = vcmp.eq.f32.partialorder %v1514_v30, %v3663_v9 }
0x1fc6   :  { %v1518_v42 = vsel %vm1517_vm0, %v1513_v37, inf  ;;  %vm3719_vm0 = vcmp.eq.f32.partialorder %v3557_v54, %v2239_v52  ;;  %v4075_v37 = vld [vmem:[#allocation10_spill] sm:$0xff] }
0x1fc7   :  { %1519 = vmin.xlane.f32.xlu0 %v1518_v42  ;;  %v4076_v42 = vld [vmem:[#allocation19_spill] sm:$0xff] }
0x1fc8   :  { %v3680_v49 = vpop.permute.xlu1 %1640  ;;  %v2071_v60 = vrot.slane %v4076_v42, %v3298_v41  ;;  %v2079_v31 = vrot.slane %v4076_v42, %v3398_v5 }
0x1fc9   :  { %v1948_v28 = vsel %vm3683_vm11, %v3680_v49, 5  ;;  %v1949_v50 = vsel %vm3688_vm10, %v3680_v49, 5  ;;  %v2250_v22 = vsel %vm3693_vm12, %v3680_v49, 5  ;;  %v1950_v33 = vsel %vm3698_vm14, %v3680_v49, 5 }
0x1fca   :  { %v2252_v34 = vsel %vm3703_vm13, %v3680_v49, 5  ;;  %v2253_v45 = vsel %vm3714_vm9, %v3680_v49, 5  ;;  %v2254_v54 = vsel %vm3719_vm0, %v3680_v49, 5  ;;  %v1642_v39 = vsel %vm1634_vm8, %v3680_v49, 5 }
0x1fcb   :  { %v1643_v10 = vsel %vm1635_vm7, %v3680_v49, 5  ;;  %v1644_v2 = vsel %vm1636_vm6, %v3680_v49, 5  ;;  %v1645_v0 = vsel %vm1637_vm15, %v3680_v49, 5  ;;  %vm1638_vm8 = vcmp.eq.f32.partialorder %v3415_v46, %v1628_v4  ;;  %v4081_v4 = vld [vmem:[#allocation17_spill] sm:$0xff] }
0x1fcc   :  { %v1646_v23 = vsel %vm1638_vm8, %v3680_v49, 5  ;;  %vm1789_vm7 = vcmp.eq.f32.partialorder %v3432_v38, %v1767_v56  ;;  %vm1791_vm6 = vcmp.eq.f32.partialorder %v3440_v55, %v1775_v8  ;;  %vm1941_vm15 = vcmp.eq.f32.partialorder %v4073_v15, %v1919_v44 }
0x1fcd   :  { %v1794_v21 = vsel %vm1789_vm7, %v3680_v49, 5  ;;  %v1796_v46 = vsel %vm1791_vm6, %v3680_v49, 5  ;;  %v1946_v38 = vsel %vm1941_vm15, %v3680_v49, 5  ;;  %vm1942_vm8 = vcmp.eq.f32.partialorder %v4074_v19, %v1923_v24 }
0x1fce   :  { %v1947_v55 = vsel %vm1942_vm8, %v3680_v49, 5  ;;  %vm1792_vm7 = vcmp.eq.f32.partialorder %v4075_v37, %v1779_v47  ;;  %vm2093_vm6 = vcmp.eq.f32.partialorder %v4077_v32, %v2071_v60  ;;  %vm1793_vm15 = vcmp.eq.f32.partialorder %v4078_v63, %v1783_v51 }
0x1fcf   :  { %v1797_v20 = vsel %vm1792_vm7, %v3680_v49, 5  ;;  %v2098_v59 = vsel %vm2093_vm6, %v3680_v49, 5  ;;  %v1798_v52 = vsel %vm1793_vm15, %v3680_v49, 5  ;;  %vm2095_vm8 = vcmp.eq.f32.partialorder %v4079_v61, %v2079_v31 }
0x1fd0   :  { %vm2246_vm7 = vcmp.eq.f32.partialorder %v4080_v11, %v2227_v27  ;;  %v1771_v11 = vrot.slane %v3466_v48, %v3308_v18 }
0x1fd1   :  { %v2251_v14 = vsel %vm2246_vm7, %v3680_v49, 5 }
0x1fdd   :  { %1648 = vperm.xlu0 %2823, %v1642_v39   ;;  %v2100_v39 = vsel %vm2095_vm8, %v3680_v49, 5 }
0x1fe1   :  { %1651 = vperm.xlu0 %2823, %v1643_v10   ;;  %v2083_v10 = vrot.slane %v4076_v42, %v3451_v57 }
0x1fe3   :  { %vm2096_vm6 = vcmp.eq.f32.partialorder %v4081_v4, %v2083_v10  ;;  %v4084_v10 = vld [vmem:[#allocation9_spill] sm:$0xff]  ;;  %v2075_v4 = vrot.slane %v4076_v42, %v3308_v18 }
0x1fe4   :  { %v2101_v53 = vsel %vm2096_vm6, %v3680_v49, 5 }
0x1fe5   :  { %1654 = vperm.xlu0 %2823, %v1644_v2  }
0x1fe9   :  { %1657 = vperm.xlu0 %2823, %v1645_v0   ;;  %v2087_v0 = vrot.slane %v4076_v42, %v3293_v35 }
0x1fed   :  { %1660 = vperm.xlu0 %2823, %v1646_v23   ;;  %v4082_v23 = vld [vmem:[#allocation18_spill] sm:$0xff] }
0x1fee   :  { %vm2097_vm15 = vcmp.eq.f32.partialorder %v4082_v23, %v2087_v0  ;;  %v4085_v0 = vld [vmem:[#allocation15_spill] sm:$0xff] }
0x1fef   :  { %v2102_v8 = vsel %vm2097_vm15, %v3680_v49, 5  ;;  %vm1790_vm15 = vcmp.eq.f32.partialorder %v4084_v10, %v1771_v11 }
0x1ff1   :  { %1800 = vperm.xlu0 %2823, %v1794_v21  }
0x1ff5   :  { %1806 = vperm.xlu0 %2823, %v1796_v46  }
0x1ff9   :  { %1952 = vperm.xlu0 %2823, %v1946_v38   ;;  %v3796_v2 = vpop.xlane.xlu1 %2369 }
0x1ffa   :  { %v2375_v56 = vrot.slane %v3796_v2, %v3298_v41  ;;  %v2383_v21 = vrot.slane %v3796_v2, %v3398_v5  ;;  %v2387_v46 = vrot.slane %v3796_v2, %v3451_v57  ;;  %v2379_v48 = vrot.slane %v3796_v2, %v3308_v18 }
0x1ffb   :  { %v2391_v1 = vrot.slane %v3796_v2, %v3293_v35 }
0x1ffc   :  { %vm2397_vm8 = vcmp.eq.f32.partialorder %v3613_v62, %v2375_v56  ;;  %vm2399_vm7 = vcmp.eq.f32.partialorder %v3621_v12, %v2383_v21  ;;  %vm2400_vm6 = vcmp.eq.f32.partialorder %v3625_v36, %v2387_v46  ;;  %v1522_v62 = vcvt.f32.s32 %v3663_v9 }
0x1ffd   :  { %1955 = vperm.xlu0 %2823, %v1947_v55   ;;  %v2402_v44 = vsel %vm2397_vm8, %v3680_v49, 5  ;;  %v2404_v41 = vsel %vm2399_vm7, %v3680_v49, 5  ;;  %v2405_v15 = vsel %vm2400_vm6, %v3680_v49, 5  ;;  %vm2094_vm8 = vcmp.eq.f32.partialorder %v4085_v0, %v2075_v4 }
0x1ffe   :  { %v1523_v5 = vshll.u32 %v1522_v62, 16  ;;  %vm2398_vm11 = vcmp.eq.f32.partialorder %v3617_v6, %v2379_v48  ;;  %vm2401_vm10 = vcmp.eq.f32.partialorder %v3629_v13, %v2391_v1 }
0x1fff   :  { %v2403_v25 = vsel %vm2398_vm11, %v3680_v49, 5  ;;  %v2406_v17 = vsel %vm2401_vm10, %v3680_v49, 5 }
0x2001   :  { %1809 = vperm.xlu0 %2823, %v1797_v20  }
0x2005   :  { %2104 = vperm.xlu0 %2823, %v2098_v59  }
0x2009   :  { %1812 = vperm.xlu0 %2823, %v1798_v52  }
0x200d   :  { %2110 = vperm.xlu0 %2823, %v2100_v39  }
0x2011   :  { %2259 = vperm.xlu0 %2823, %v2251_v14   ;;  %v1795_v14 = vsel %vm1790_vm15, %v3680_v49, 5 }
0x2015   :  { %2113 = vperm.xlu0 %2823, %v2101_v53   ;;  %v2099_v53 = vsel %vm2094_vm8, %v3680_v49, 5 }
0x2019   :  { %2116 = vperm.xlu0 %2823, %v2102_v8  }
0x201d   :  { %2408 = vperm.xlu0 %2823, %v2402_v44  }
0x2021   :  { %2414 = vperm.xlu0 %2823, %v2404_v41  }
0x2025   :  { %2417 = vperm.xlu0 %2823, %v2405_v15  }
0x2054   :  { %v1520_v24 = vpop.xlane.xlu0 %1519 }
0x2055   :  { %v1521_v38 = vcvt.f32.s32 %v1520_v24 }
0x2057   :  { %v1524_v19 = vadd.s32 %v1523_v5, %v1521_v38 }
0x2059   :  { %v2485_v47 = vrot.slane %v1524_v19, %v3355_v26 }
0x205b   :  { %v3820_v12 = vsel %vm1021_vm5, %v3596_v58, %v2485_v47  ;;  %vm4083_vm5 = vcmask 36864  }
0x205c   :  { %v1649_v57 = vpop.permute.xlu0 %1648  ;;  %vm4086_vm12 = vmmov %vm4083_vm5 }
0x205d   :  { %v1665_v9 = vrot.slane %v1649_v57, %v3355_v26  ;;  %vm4087_vm14 = vmmov %vm4083_vm5 }
0x205e   :  { %vm4088_vm13 = vmmov %vm4083_vm5 }
0x205f   :  { %vm4089_vm9 = vmmov %vm4083_vm5 }
0x2060   :  { %v1652_v55 = vpop.permute.xlu0 %1651  ;;  %vm4090_vm0 = vmmov %vm4083_vm5 }
0x2061   :  { %v1669_v36 = vrot.slane %v1652_v55, %v3355_v26 }
0x2063   :  { %v1682_v51 = vsel %vm1364_vm1, %v1669_v36, %v1665_v9 }
0x2064   :  { %v1655_v37 = vpop.permute.xlu0 %1654 }
0x2065   :  { %v1673_v20 = vrot.slane %v1655_v37, %v3355_v26 }
0x2067   :  { %v1683_v63 = vsel %vm1366_vm2, %v1673_v20, %v1682_v51 }
0x2068   :  { %v1658_v60 = vpop.permute.xlu0 %1657 }
0x2069   :  { %v1677_v32 = vrot.slane %v1658_v60, %v3355_v26 }
0x206b   :  { %v1684_v31 = vsel %vm1368_vm3, %v1677_v32, %v1683_v63 }
0x206c   :  { %v1661_v59 = vpop.permute.xlu0 %1660 }
0x206d   :  { %v1681_v58 = vrot.slane %v1661_v59, %v3355_v26 }
0x206f   :  { %v1685_v52 = vsel %vm1370_vm4, %v1681_v58, %v1684_v31 }
0x2070   :  { %v3832_v61 = vsel %vm4083_vm5, %v1685_v52, 2147483647  ;;  %v1801_v30 = vpop.permute.xlu0 %1800  ;;  %vm4092_vm5 = vcmask 1041408  }
0x2071   :  { %v1688_v27 = vshra.s32 %v3832_v61, 16 }
0x2073   :  { %v3835_v39 = vcvt.s32.f32 %v1688_v27 }
0x2074   :  { %v1807_v18 = vpop.permute.xlu0 %1806 }
0x2075   :  { %1691 = vmin.xlane.f32.xlu1 %v3835_v39  ;;  %v1825_v13 = vrot.slane %v1807_v18, %v3355_v26 }
0x2078   :  { %v1953_v7 = vpop.permute.xlu0 %1952 }
0x2079   :  { %v1969_v58 = vrot.slane %v1953_v7, %v3355_v26 }
0x2086   :  { %1803 = vperm.xlu1 %2824, %v1795_v14  }
0x208a   :  { %1958 = vperm.xlu1 %2824, %v1948_v28   ;;  %v1956_v28 = vpop.permute.xlu0 %1955 }
0x208b   :  { %v1973_v32 = vrot.slane %v1956_v28, %v3355_v26 }
0x208d   :  { %v1986_v27 = vsel %vm1364_vm1, %v1973_v32, %v1969_v58 }
0x208e   :  { %2107 = vperm.xlu1 %2824, %v2099_v53  }
0x2092   :  { %1961 = vperm.xlu1 %2824, %v1949_v50   ;;  %v1810_v50 = vpop.permute.xlu0 %1809 }
0x2093   :  { %v1829_v49 = vrot.slane %v1810_v50, %v3355_v26 }
0x2096   :  { %2256 = vperm.xlu1 %2824, %v2250_v22   ;;  %v2105_v40 = vpop.permute.xlu0 %2104 }
0x2097   :  { %v2121_v62 = vrot.slane %v2105_v40, %v3355_v26 }
0x209a   :  { %1964 = vperm.xlu1 %2824, %v1950_v33   ;;  %v1813_v29 = vpop.permute.xlu0 %1812 }
0x209b   :  { %v1833_v56 = vrot.slane %v1813_v29, %v3355_v26 }
0x209e   :  { %2262 = vperm.xlu1 %2824, %v2252_v34   ;;  %v2111_v22 = vpop.permute.xlu0 %2110  ;;  %v1817_v34 = vrot.slane %v1801_v30, %v3355_v26 }
0x209f   :  { %v2129_v38 = vrot.slane %v2111_v22, %v3355_v26 }
0x20a2   :  { %2265 = vperm.xlu1 %2824, %v2253_v45   ;;  %v2260_v33 = vpop.permute.xlu0 %2259 }
0x20a3   :  { %v2277_v28 = vrot.slane %v2260_v33, %v3355_v26 }
0x20a6   :  { %2268 = vperm.xlu1 %2824, %v2254_v54   ;;  %v2114_v54 = vpop.permute.xlu0 %2113 }
0x20a7   :  { %v2133_v47 = vrot.slane %v2114_v54, %v3355_v26 }
0x20aa   :  { %2411 = vperm.xlu1 %2824, %v2403_v25   ;;  %v2117_v24 = vpop.permute.xlu0 %2116 }
0x20ab   :  { %v2137_v55 = vrot.slane %v2117_v24, %v3355_v26 }
0x20ae   :  { %2420 = vperm.xlu1 %2824, %v2406_v17   ;;  %v2409_v53 = vpop.permute.xlu0 %2408 }
0x20af   :  { %v2425_v33 = vrot.slane %v2409_v53, %v3355_v26 }
0x20b2   :  { %v2415_v50 = vpop.permute.xlu0 %2414 }
0x2102   :  { %v3882_v6 = vpop.xlane.xlu1 %1691 }
0x2106   :  { %v1804_v35 = vpop.permute.xlu1 %1803 }
0x2107   :  { %v1821_v45 = vrot.slane %v1804_v35, %v3355_v26 }
0x2109   :  { %v1834_v42 = vsel %vm1364_vm1, %v1821_v45, %v1817_v34 }
0x210a   :  { %v1835_v23 = vsel %vm1366_vm2, %v1825_v13, %v1834_v42  ;;  %v1959_v8 = vpop.permute.xlu1 %1958 }
0x210b   :  { %v1836_v21 = vsel %vm1368_vm3, %v1829_v49, %v1835_v23  ;;  %v1977_v63 = vrot.slane %v1959_v8, %v3355_v26  ;;  %v2418_v49 = vpop.permute.xlu0 %2417  ;;  %v2433_v8 = vrot.slane %v2415_v50, %v3355_v26 }
0x210c   :  { %v1837_v44 = vsel %vm1370_vm4, %v1833_v56, %v1836_v21  ;;  %v2437_v21 = vrot.slane %v2418_v49, %v3355_v26 }
0x210d   :  { %v3894_v46 = vsel %vm4086_vm12, %v1837_v44, 2147483647  ;;  %v1987_v10 = vsel %vm1366_vm2, %v1977_v63, %v1986_v27 }
0x210e   :  { %v2108_v41 = vpop.permute.xlu1 %2107  ;;  %v1840_v15 = vshra.s32 %v3894_v46, 16 }
0x210f   :  { %v2125_v5 = vrot.slane %v2108_v41, %v3355_v26 }
0x2110   :  { %v3900_v19 = vcvt.s32.f32 %v1840_v15 }
0x2111   :  { %v2138_v57 = vsel %vm1364_vm1, %v2125_v5, %v2121_v62 }
0x2112   :  { %v2139_v37 = vsel %vm1366_vm2, %v2129_v38, %v2138_v57  ;;  %v1962_v36 = vpop.permute.xlu1 %1961  ;;  %1843 = vmin.xlane.f32.xlu0 %v3900_v19 }
0x2113   :  { %v2140_v60 = vsel %vm1368_vm3, %v2133_v47, %v2139_v37  ;;  %v1981_v31 = vrot.slane %v1962_v36, %v3355_v26 }
0x2114   :  { %v2141_v20 = vsel %vm1370_vm4, %v2137_v55, %v2140_v60  ;;  %v1687_v55 = vand.u32 65535, %v3832_v61 }
0x2115   :  { %v3910_v9 = vsel %vm4087_vm14, %v2141_v20, 2147483647  ;;  %v1988_v4 = vsel %vm1368_vm3, %v1981_v31, %v1987_v10  ;;  %v4091_v20 = vsub.s32 7, %v3028_v16 }
0x2116   :  { %v2257_v51 = vpop.permute.xlu1 %2256  ;;  %v2144_v59 = vshra.s32 %v3910_v9, 16  ;;  %v1689_v36 = vcvt.s32.f32 %v1687_v55 }
0x2117   :  { %v2273_v30 = vrot.slane %v2257_v51, %v3355_v26  ;;  %v2464_v32 = vrot.slane %v3300_v43, %v4091_v20  ;;  %v1839_v51 = vand.u32 65535, %v3894_v46 }
0x2118   :  { %v3917_v52 = vcvt.s32.f32 %v2144_v59 }
0x2119   :  { %v2290_v29 = vsel %vm1364_vm1, %v2277_v28, %v2273_v30  ;;  %v1841_v63 = vcvt.s32.f32 %v1839_v51 }
0x211a   :  { %v1965_v11 = vpop.permute.xlu1 %1964  ;;  %2147 = vmin.xlane.f32.xlu0 %v3917_v52 }
0x211b   :  { %v1985_v14 = vrot.slane %v1965_v11, %v3355_v26  ;;  %v2143_v11 = vand.u32 65535, %v3910_v9  ;;  %v1698_v9 = vcvt.f32.s32 %v3882_v6 }
0x211d   :  { %v1989_v0 = vsel %vm1370_vm4, %v1985_v14, %v1988_v4  ;;  %v2145_v43 = vcvt.s32.f32 %v2143_v11 }
0x211e   :  { %v2263_v48 = vpop.permute.xlu1 %2262  ;;  %v1990_v1 = vsel %vm4088_vm13, %v1989_v0, 2147483647 }
0x211f   :  { %v1992_v25 = vshra.s32 %v1990_v1, 16  ;;  %v2281_v7 = vrot.slane %v2263_v48, %v3355_v26  ;;  %v1991_v58 = vand.u32 65535, %v1990_v1 }
0x2121   :  { %v1994_v17 = vcvt.s32.f32 %v1992_v25  ;;  %v2291_v35 = vsel %vm1366_vm2, %v2281_v7, %v2290_v29  ;;  %v1993_v27 = vcvt.s32.f32 %v1991_v58 }
0x2122   :  { %v2266_v18 = vpop.permute.xlu1 %2265 }
0x2123   :  { %1995 = vmin.xlane.f32.xlu1 %v1994_v17  ;;  %v2285_v40 = vrot.slane %v2266_v18, %v3355_v26 }
0x2125   :  { %v2292_v45 = vsel %vm1368_vm3, %v2285_v40, %v2291_v35 }
0x2126   :  { %v2269_v22 = vpop.permute.xlu1 %2268 }
0x2127   :  { %v2289_v34 = vrot.slane %v2269_v22, %v3355_v26 }
0x2129   :  { %v2293_v13 = vsel %vm1370_vm4, %v2289_v34, %v2292_v45 }
0x212a   :  { %v2412_v54 = vpop.permute.xlu1 %2411  ;;  %v2294_v42 = vsel %vm4089_vm9, %v2293_v13, 2147483647 }
0x212b   :  { %v2429_v56 = vrot.slane %v2412_v54, %v3355_v26  ;;  %v2296_v23 = vshra.s32 %v2294_v42, 16  ;;  %v2295_v10 = vand.u32 65535, %v2294_v42 }
0x212d   :  { %v2442_v44 = vsel %vm1364_vm1, %v2429_v56, %v2425_v33  ;;  %v2298_v41 = vcvt.s32.f32 %v2296_v23  ;;  %vm1693_vm1 = vcmp.eq.f32.partialorder %v3835_v39, %v3882_v6  ;;  %v2297_v14 = vcvt.s32.f32 %v2295_v10 }
0x212e   :  { %v2443_v15 = vsel %vm1366_vm2, %v2433_v8, %v2442_v44  ;;  %v2421_v62 = vpop.permute.xlu1 %2420  ;;  %v1694_v60 = vsel %vm1693_vm1, %v1689_v36, inf }
0x212f   :  { %v2441_v24 = vrot.slane %v2421_v62, %v3355_v26  ;;  %v2444_v5 = vsel %vm1368_vm3, %v2437_v21, %v2443_v15  ;;  %2299 = vmin.xlane.f32.xlu0 %v2298_v41 }
0x2131   :  { %v2445_v38 = vsel %vm1370_vm4, %v2441_v24, %v2444_v5 }
0x2132   :  { %v2446_v47 = vsel %vm4090_vm0, %v2445_v38, 2147483647 }
0x2133   :  { %v2448_v57 = vshra.s32 %v2446_v47, 16  ;;  %v2447_v0 = vand.u32 65535, %v2446_v47 }
0x2135   :  { %v2450_v37 = vcvt.s32.f32 %v2448_v57  ;;  %v2449_v48 = vcvt.s32.f32 %v2447_v0 }
0x2137   :  { %2451 = vmin.xlane.f32.xlu1 %v2450_v37 }
0x213b   :  { %1695 = vmin.xlane.f32.xlu1 %v1694_v60 }
0x2145   :  { %2466 = vbcast.lane.b32.xlu0 %v2464_v32, 256 }
0x219f   :  { %v1844_v59 = vpop.xlane.xlu0 %1843 }
0x21a0   :  { %vm1845_vm2 = vcmp.eq.f32.partialorder %v3900_v19, %v1844_v59 }
0x21a1   :  { %v1846_v61 = vsel %vm1845_vm2, %v1841_v63, inf }
0x21a2   :  { %1847 = vmin.xlane.f32.xlu1 %v1846_v61 }
0x21a7   :  { %v3954_v31 = vpop.xlane.xlu0 %2147 }
0x21a8   :  { %vm2149_vm4 = vcmp.eq.f32.partialorder %v3917_v52, %v3954_v31 }
0x21a9   :  { %v2150_v46 = vsel %vm2149_vm4, %v2145_v43, inf }
0x21b0   :  { %v1996_v39 = vpop.xlane.xlu1 %1995 }
0x21b1   :  { %vm1997_vm3 = vcmp.eq.f32.partialorder %v1994_v17, %v1996_v39  ;;  %v1699_v17 = vshll.u32 %v1698_v9, 16 }
0x21b2   :  { %v1998_v16 = vsel %vm1997_vm3, %v1993_v27, inf }
0x21b3   :  { %1999 = vmin.xlane.f32.xlu1 %v1998_v16 }
0x21b7   :  { %2151 = vmin.xlane.f32.xlu1 %v2150_v46 }
0x21bc   :  { %v2300_v19 = vpop.xlane.xlu0 %2299 }
0x21bd   :  { %vm2301_vm7 = vcmp.eq.f32.partialorder %v2298_v41, %v2300_v19 }
0x21be   :  { %v2302_v4 = vsel %vm2301_vm7, %v2297_v14, inf }
0x21bf   :  { %2303 = vmin.xlane.f32.xlu1 %v2302_v4 }
0x21c0   :  { %v2467_v52 = vpop.permute.xlu0 %2466 }
0x21c1   :  { %v2469_v18 = vadd.f32 %v2467_v52, %v3796_v2 }
0x21c3   :  { %v2518_v50 = vadd.f32 %v2469_v18, %v3411_v3 }
0x21c4   :  { %v3959_v53 = vpop.xlane.xlu1 %2451 }
0x21c5   :  { %vm2453_vm6 = vcmp.eq.f32.partialorder %v2450_v37, %v3959_v53 }
0x21c6   :  { %v2454_v1 = vsel %vm2453_vm6, %v2449_v48, inf }
0x21c7   :  { %2455 = vmin.xlane.f32.xlu0 %v2454_v1 }
0x21c8   :  { %v1696_v25 = vpop.xlane.xlu1 %1695 }
0x21c9   :  { %v1697_v30 = vcvt.f32.s32 %v1696_v25 }
0x21cb   :  { %v1700_v7 = vadd.s32 %v1699_v17, %v1697_v30 }
0x21cd   :  { %v2489_v28 = vrot.slane %v1700_v7, %v3355_v26 }
0x21cf   :  { %v2511_v40 = vsel %vm4092_vm5, %v3820_v12, %v2489_v28 }
0x21d0   :  { %2521 = vperm.xlu1 %2824, %v2518_v50  }
0x21d1   :  { %2900 = shalt.err (!%p2897_p4)
}
0x21d2   :  { %s2901_s26 = scalar_lea.hbm %s4020_s2, 128 }
0x21d3   :  { %p2902_p5 = scmp.ne.s32.totalorder %s4020_s2, %s2901_s26  ;;  %p2905_p6 = scmp.lt.u32.totalorder %s2901_s26, %s4020_s2 }
0x21d5   :  { %p2907_p7 = pnand %p2905_p6, %p2902_p5 }
0x21d7   :  { %2910 = shalt.err (!%p2907_p7)
}
0x21d8   :  { %2539 = dma.vmem_to_hbm [thread:$0]  %s2537_s22, 128, %s4020_s2, [#allocation3]   ;;  %v1850_v3 = vcvt.f32.s32 %v1844_v59  ;;  %vm4093_vm15 = vcmask 1042432   ;;  %v2002_v34 = vcvt.f32.s32 %v1996_v39  ;;  %v2154_v13 = vcvt.f32.s32 %v3954_v31 }
0x21d9   :  { %vm4094_vm8 = vcmask 1043456   ;;  %v2306_v41 = vcvt.f32.s32 %v2300_v19  ;;  %vm4095_vm11 = vcmask 1044480   ;;  %vm2528_vm10 = vcmask 32768   ;;  %s2967_s2 = smov [#allocation4]   ;;  %s2968_s8 = smov [#allocation6]  }
0x21da   :  { %v1851_v12 = vshll.u32 %v1850_v3, 16  ;;  %v2003_v49 = vshll.u32 %v2002_v34, 16  ;;  %v2155_v56 = vshll.u32 %v2154_v13, 16  ;;  %v2458_v55 = vcvt.f32.s32 %v3959_v53  ;;  %s2546_s7 = sshll.u32 %s2967_s2, 4  ;;  %s2556_s9 = sshll.u32 %s2968_s8, 4  ;;  %s2547_s7 = int_to_ptr.vmem [resolvable:$true] %s2546_s7  ;;  %s2557_s9 = int_to_ptr.vmem [resolvable:$true] %s2556_s9 }
0x21db   :  { %v2307_v5 = vshll.u32 %v2306_v41, 16  ;;  %vm4096_vm12 = vcmask 1045504   ;;  %vm4097_vm14 = vcmask 1046528   ;;  %vm4098_vm13 = vcmask 39936   ;;  %s2911_s10 = scalar_lea.vmem %s2547_s7, 128  ;;  %p2916_p9 = scmp.lt.s32.totalorder %s2547_s7, %s2547_s7 }
0x21dc   :  { %v2459_v32 = vshll.u32 %v2458_v55, 16  ;;  %p2912_p8 = scmp.ne.s32.totalorder %s2547_s7, %s2911_s10  ;;  %p2917_p10 = scmp.lt.s32.totalorder %s2911_s10, %s2911_s10 }
0x21de   :  { %p2918_p11 = por %p2917_p10, %p2916_p9 }
0x21e0   :  { %p2919_p12 = pnand %p2918_p11, %p2912_p8 }
0x222f   :  { %v1848_v2 = vpop.xlane.xlu1 %1847 }
0x2230   :  { %v1849_v6 = vcvt.f32.s32 %v1848_v2 }
0x2232   :  { %v1852_v29 = vadd.s32 %v1851_v12, %v1849_v6 }
0x2234   :  { %v2493_v22 = vrot.slane %v1852_v29, %v3355_v26 }
0x2236   :  { %v2512_v35 = vsel %vm4093_vm15, %v2511_v40, %v2493_v22 }
0x2240   :  { %v2000_v45 = vpop.xlane.xlu1 %1999 }
0x2241   :  { %v2001_v54 = vcvt.f32.s32 %v2000_v45 }
0x2243   :  { %v2004_v42 = vadd.s32 %v2003_v49, %v2001_v54 }
0x2244   :  { %v2152_v33 = vpop.xlane.xlu1 %2151 }
0x2245   :  { %v2497_v23 = vrot.slane %v2004_v42, %v3355_v26  ;;  %v2153_v8 = vcvt.f32.s32 %v2152_v33 }
0x2247   :  { %v2513_v21 = vsel %vm4094_vm8, %v2512_v35, %v2497_v23  ;;  %v2156_v44 = vadd.s32 %v2155_v56, %v2153_v8 }
0x2249   :  { %v2501_v15 = vrot.slane %v2156_v44, %v3355_v26 }
0x224b   :  { %v2514_v62 = vsel %vm4095_vm11, %v2513_v21, %v2501_v15 }
0x224c   :  { %v2304_v24 = vpop.xlane.xlu1 %2303 }
0x224d   :  { %v2305_v38 = vcvt.f32.s32 %v2304_v24 }
0x224f   :  { %v2308_v47 = vadd.s32 %v2307_v5, %v2305_v38 }
0x2250   :  { %v2522_v57 = vpop.permute.xlu1 %2521 }
0x2251   :  { %v2505_v37 = vrot.slane %v2308_v47, %v3355_v26  ;;  %v2526_v36 = vrot.slane %v2522_v57, %v3355_v26 }
0x2253   :  { %v2515_v60 = vsel %vm4096_vm12, %v2514_v62, %v2505_v37  ;;  %2529 = vst.msk [vmem:[#allocation6] sm:$0x1] %vm2528_vm10, %v2526_v36 }
0x2254   :  { %v2456_v20 = vpop.xlane.xlu0 %2455 }
0x2255   :  { %v2457_v51 = vcvt.f32.s32 %v2456_v20 }
0x2257   :  { %v2460_v59 = vadd.s32 %v2459_v32, %v2457_v51 }
0x2259   :  { %v2509_v63 = vrot.slane %v2460_v59, %v3355_v26 }
0x225b   :  { %v2516_v61 = vsel %vm4097_vm14, %v2515_v60, %v2509_v63 }
0x225c   :  { %2517 = vst.msk [vmem:[#allocation4] sm:$0xff] %vm4098_vm13, %v2516_v61 }
0x225d   :  { %2922 = shalt.err (!%p2919_p12)
}
0x225e   :  { %s2923_s12 = scalar_lea.hbm %s4021_s3, 128 }
0x225f   :  { %p2924_p13 = scmp.ne.s32.totalorder %s4021_s3, %s2923_s12  ;;  %p2927_p0 = scmp.lt.u32.totalorder %s2923_s12, %s4021_s3 }
0x2261   :  { %p2929_p1 = pnand %p2927_p0, %p2924_p13 }
0x2263   :  { %2932 = shalt.err (!%p2929_p1)
}
0x2264   :  { %2549 = dma.vmem_to_hbm [thread:$0]  %s2547_s7, 128, %s4021_s3, [#allocation5]  }
0x2265   :  { %s2933_s19 = scalar_lea.vmem %s2557_s9, 16  ;;  %s2937_s20 = scalar_lea.vmem %s2557_s9, 32 }
0x2266   :  { %p2934_p2 = scmp.ne.s32.totalorder %s2557_s9, %s2933_s19  ;;  %p2938_p3 = scmp.lt.s32.totalorder %s2557_s9, %s2557_s9 }
0x2267   :  { %p2939_p4 = scmp.lt.s32.totalorder %s2937_s20, %s2933_s19 }
0x2269   :  { %p2940_p5 = por %p2939_p4, %p2938_p3 }
0x226b   :  { %p2941_p6 = pnand %p2940_p5, %p2934_p2 }
0x226d   :  { %2944 = shalt.err (!%p2941_p6)
}
0x226e   :  { %s2945_s22 = scalar_lea.hbm %s4022_s4, 16 }
0x226f   :  { %p2946_p7 = scmp.ne.s32.totalorder %s4022_s4, %s2945_s22  ;;  %p2949_p8 = scmp.lt.u32.totalorder %s2945_s22, %s4022_s4 }
0x2271   :  { %p2951_p9 = pnand %p2949_p8, %p2946_p7 }
0x2273   :  { %2954 = shalt.err (!%p2951_p9)
}
0x2274   :  { %2559 = dma.vmem_to_hbm [thread:$0]  %s2557_s9, 16, %s4022_s4, [#allocation5]  }
0x2275   :  { %2955 = dma.done.wait [#allocation3], 128  }
0x2276   :  { %2956 = vsyncadd [#allocation3], 4294967168 }
0x2277   :  { %2957 = dma.done.wait [#allocation5], 144  }
0x2278   :  { %2958 = vsyncadd [#allocation5], 4294967152 }
0x2279   :  { %2569 = vsyncpa [#allocation3], 1 }
0x227a   :  { %2570 = vsyncpa [#allocation5], 1 }

</bundles_post_ra>
